<compile_context>
chip_gen: v6e
topology: v6e:2x2x1
jax: 0.10.0
libtpu: 0.0.40
codegen_flags: <defaults>
</compile_context>

<pallas_src>
import functools

import jax
import jax.numpy as jnp
from jax import lax
from jax.experimental import pallas as pl
from jax.experimental.pallas import tpu as pltpu

NUM_CLASSES = 31
FEAT_DIM = 2048      # ResNet50 pooled feature dim
BOTTLE_DIM = 256
PAD_CLASSES = 128    # lane-dense logits slab (sliced back to 31 outside)
KERNEL_MUL = 2.0
KERNEL_NUM = 5


# ----------------------------------------------------------------------------
# Kernel 1: fused classifier head on the concatenated [source; target] batch
#           bottle (2048 -> 256, bf16 weight / f32 acc) -> cls_fc (256 -> 128pad)
# ----------------------------------------------------------------------------
def head_kernel(x_ref, wb_ref, bb_ref, wc_ref, bc_ref, feat_ref, logit_ref):
    x = x_ref[...].astype(jnp.bfloat16)                        # (2B, 2048)
    feat = jnp.dot(x, wb_ref[...],
                   preferred_element_type=jnp.float32) + bb_ref[...]   # (2B, 256)
    feat_ref[...] = feat
    logit_ref[...] = jnp.dot(feat, wc_ref[...],
                             preferred_element_type=jnp.float32) + bc_ref[...]  # (2B, 128)


def head_forward(x, wb_bf16, bb, wc_pad, bc_pad):
    n = x.shape[0]
    feat, logits = pl.pallas_call(
        head_kernel,
        out_shape=(jax.ShapeDtypeStruct((n, BOTTLE_DIM), jnp.float32),
                   jax.ShapeDtypeStruct((n, PAD_CLASSES), jnp.float32)),
        in_specs=[pl.BlockSpec(memory_space=pltpu.MemorySpace.VMEM)] * 5,
        out_specs=(pl.BlockSpec(memory_space=pltpu.MemorySpace.VMEM),
                   pl.BlockSpec(memory_space=pltpu.MemorySpace.VMEM)),
    )(x, wb_bf16, bb, wc_pad, bc_pad)
    return feat, logits


# ----------------------------------------------------------------------------
# Kernel 2: LMMD loss — Gram-matrix (MXU) formulation, block-wise SS/TT/ST
# ----------------------------------------------------------------------------
def _dotT(a, b):
    # a @ b.T without materializing a transpose (contract the feature dim)
    return lax.dot_general(a, b, (((1,), (1,)), ((), ())),
                           preferred_element_type=jnp.float32)


def lmmd_kernel(src_ref, tgt_ref, wss_ref, wtt_ref, wst_ref, loss_ref,
                *, batch, kernel_mul, kernel_num):
    s = src_ref[...]                                           # (B, D)
    t = tgt_ref[...]
    d = s.shape[1]

    # Gram blocks on the MXU
    ss = _dotT(s, s)                                           # (B, B)
    tt = _dotT(t, t)
    st = _dotT(s, t)

    # squared norms: column form via VPU reduce, row form via a tiny matmul
    s2 = s * s
    t2 = t * t
    ones_row = jnp.ones((1, d), jnp.float32)
    s_sq_col = jnp.sum(s2, axis=1, keepdims=True)              # (B, 1)
    t_sq_col = jnp.sum(t2, axis=1, keepdims=True)              # (B, 1)
    s_sq_row = _dotT(ones_row, s2)                             # (1, B)
    t_sq_row = _dotT(ones_row, t2)                             # (1, B)

    # ||a - b||^2 = ||a||^2 + ||b||^2 - 2 a.b   (clamped against cancellation)
    l2_ss = jnp.maximum(s_sq_col + s_sq_row - 2.0 * ss, 0.0)
    l2_tt = jnp.maximum(t_sq_col + t_sq_row - 2.0 * tt, 0.0)
    l2_st = jnp.maximum(s_sq_col + t_sq_row - 2.0 * st, 0.0)

    # data-dependent bandwidth (fix_sigma=None); full-matrix sum reconstructed
    # from the blocks (TS block == ST.T by symmetry)
    n = 2 * batch
    l2_sum = jnp.sum(l2_ss) + jnp.sum(l2_tt) + 2.0 * jnp.sum(l2_st)
    bandwidth = l2_sum / jnp.float32(n * n - n)
    bandwidth = bandwidth / (kernel_mul ** (kernel_num // 2))
    inv_bw = 1.0 / bandwidth     # 0/0 case -> inf -> NaN in exp -> guard (matches torch)

    neg_ss = -l2_ss
    neg_tt = -l2_tt
    neg_st = -l2_st
    kern_ss = jnp.zeros_like(ss)
    kern_tt = jnp.zeros_like(tt)
    kern_st = jnp.zeros_like(st)
    for i in range(kernel_num):                                # hoisted reciprocals
        inv_i = inv_bw * (1.0 / (kernel_mul ** i))
        kern_ss = kern_ss + jnp.exp(neg_ss * inv_i)
        kern_tt = kern_tt + jnp.exp(neg_tt * inv_i)
        kern_st = kern_st + jnp.exp(neg_st * inv_i)

    # torch: if torch.sum(torch.isnan(sum(kernels))): return 0
    has_nan = (jnp.any(jnp.isnan(kern_ss)) | jnp.any(jnp.isnan(kern_tt))
               | jnp.any(jnp.isnan(kern_st)))

    loss_val = jnp.sum(wss_ref[...] * kern_ss
                       + wtt_ref[...] * kern_tt
                       - 2.0 * wst_ref[...] * kern_st)
    loss_ref[...] = jnp.broadcast_to(
        jnp.where(has_nan, jnp.float32(0.0), loss_val), (1, 1))


def lmmd_loss_pallas(src, tgt, wss, wtt, wst):
    b = src.shape[0]
    kernel = functools.partial(lmmd_kernel, batch=b,
                               kernel_mul=KERNEL_MUL, kernel_num=KERNEL_NUM)
    loss = pl.pallas_call(
        kernel,
        out_shape=jax.ShapeDtypeStruct((1, 1), jnp.float32),
        in_specs=[pl.BlockSpec(memory_space=pltpu.MemorySpace.VMEM)] * 5,
        out_specs=pl.BlockSpec(memory_space=pltpu.MemorySpace.VMEM),
    )(src, tgt, wss, wtt, wst)
    return loss.reshape(1)      # torch returns a shape-(1,) tensor


# ----------------------------------------------------------------------------
# cal_weight ported to JAX (stays on device, jit-able) — mirrors
# LMMD_loss.cal_weight semantics exactly
# ----------------------------------------------------------------------------
def cal_weight_jax(s_label, t_prob, class_num):
    s_onehot = jax.nn.one_hot(s_label, class_num, dtype=jnp.float32)   # (B, C)
    s_sum = jnp.sum(s_onehot, axis=0, keepdims=True)                   # (1, C)
    s_sum = jnp.where(s_sum == 0, jnp.float32(100.0), s_sum)
    s_vec = s_onehot / s_sum

    t_sca = jnp.argmax(t_prob, axis=1)                                 # (B,)
    t_onehot = jax.nn.one_hot(t_sca, class_num, dtype=jnp.float32)
    t_sum = jnp.sum(t_prob, axis=0, keepdims=True)
    t_sum = jnp.where(t_sum == 0, jnp.float32(100.0), t_sum)
    t_vec = t_prob / t_sum

    # classes present in BOTH source labels and target argmax labels
    present = (jnp.sum(s_onehot, axis=0) > 0) & (jnp.sum(t_onehot, axis=0) > 0)
    mask = present.astype(jnp.float32)[None, :]                        # (1, C)
    s_vec = s_vec * mask
    t_vec = t_vec * mask

    wss = s_vec @ s_vec.T
    wtt = t_vec @ t_vec.T
    wst = s_vec @ t_vec.T

    length = jnp.sum(mask)
    # length == 0 -> torch broadcasts np.array([0]) -> zero weights -> zero loss
    scale = jnp.where(length > 0, 1.0 / jnp.maximum(length, 1.0), 0.0)
    return wss * scale, wtt * scale, wst * scale


# ----------------------------------------------------------------------------
# LoopNet.forward (fully on-device, jit'ed)
# ----------------------------------------------------------------------------
def _loopnet_forward(params, source_feat, target_feat, s_label):
    wb_bf16, bb, wc_pad, bc_pad = params
    b = source_feat.shape[0]

    # fused head over [source; target]
    x = jnp.concatenate([source_feat, target_feat], axis=0)            # (2B, 2048)
    feat, logits_pad = head_forward(x, wb_bf16, bb, wc_pad, bc_pad)
    logits = logits_pad[:, :NUM_CLASSES]

    feat_s, feat_t = feat[:b], feat[b:]
    s_pred, t_logits = logits[:b], logits[b:]
    t_prob = jax.nn.softmax(t_logits, axis=1)

    wss, wtt, wst = cal_weight_jax(s_label, t_prob, NUM_CLASSES)
    loss = lmmd_loss_pallas(feat_s, feat_t, wss, wtt, wst)
    return s_pred, loss


loopnet_forward = jax.jit(_loopnet_forward)


def linear_init(key, fan_in, fan_out):
    k_w, k_b = jax.random.split(key)
    bound = 1.0 / (fan_in ** 0.5)
    w = jax.random.uniform(k_w, (fan_in, fan_out), jnp.float32, -bound, bound)
    b = jax.random.uniform(k_b, (1, fan_out), jnp.float32, -bound, bound)
    return w, b


if __name__ == "__main__":
    key = jax.random.PRNGKey(0)
    k_src, k_tgt, k_lbl, k_bot, k_cls = jax.random.split(key, 5)

    B = 8
    # TODO(synk): the ResNet50 `feature_layers` backbone has no compact Pallas
    # port here; the kernels consume the 2048-d pooled features it would emit.
    source_feat = jax.random.normal(k_src, (B, FEAT_DIM), jnp.float32)
    target_feat = jax.random.normal(k_tgt, (B, FEAT_DIM), jnp.float32)
    s_label = jax.random.randint(k_lbl, (B,), 0, NUM_CLASSES, dtype=jnp.int32)

    wb, bb = linear_init(k_bot, FEAT_DIM, BOTTLE_DIM)      # self.bottle
    wc, bc = linear_init(k_cls, BOTTLE_DIM, NUM_CLASSES)   # self.cls_fc

    # bf16 bottle weight (halves the dominant weight DMA; f32 MXU accumulate)
    wb_bf16 = wb.astype(jnp.bfloat16)
    # lane-dense (128-wide) classifier slab; extra columns are zero
    wc_pad = jnp.zeros((BOTTLE_DIM, PAD_CLASSES), jnp.float32).at[:, :NUM_CLASSES].set(wc)
    bc_pad = jnp.zeros((1, PAD_CLASSES), jnp.float32).at[:, :NUM_CLASSES].set(bc)

    params = (wb_bf16, bb, wc_pad, bc_pad)
    s_pred, loss = loopnet_forward(params, source_feat, target_feat, s_label)
    jax.block_until_ready((s_pred, loss))
    assert s_pred.shape == (B, NUM_CLASSES) and loss.shape == (1,)
    print("KERNEL_OK")
</pallas_src>

<mosaic_0001>
module attributes {stable_mosaic.version = 11 : i64} {
  func.func @head_kernel(%arg0: memref<16x2048xf32, #tpu.memory_space<vmem>>, %arg1: memref<2048x256xbf16, #tpu.memory_space<vmem>>, %arg2: memref<1x256xf32, #tpu.memory_space<vmem>>, %arg3: memref<256x128xf32, #tpu.memory_space<vmem>>, %arg4: memref<1x128xf32, #tpu.memory_space<vmem>>, %arg5: memref<16x256xf32, #tpu.memory_space<vmem>>, %arg6: memref<16x128xf32, #tpu.memory_space<vmem>>) attributes {dimension_semantics = [], scalar_prefetch = 0 : i64, scratch_operands = 0 : i64, tpu.core_type = #tpu.core_type<tc>} {
    %c0 = arith.constant 0 : index
    %c0_0 = arith.constant 0 : index
    %0 = vector.load %arg0[%c0, %c0_0] : memref<16x2048xf32, #tpu.memory_space<vmem>>, vector<16x2048xf32>
    %1 = arith.truncf %0 : vector<16x2048xf32> to vector<16x2048xbf16>
    %c0_1 = arith.constant 0 : index
    %c0_2 = arith.constant 0 : index
    %2 = vector.load %arg1[%c0_1, %c0_2] : memref<2048x256xbf16, #tpu.memory_space<vmem>>, vector<2048x256xbf16>
    %cst = arith.constant dense<0.000000e+00> : vector<16x256xf32>
    %3 = tpu.matmul %1, %2, %cst {dimension_numbers = #tpu.dot_dimension_numbers<[1], [0], [0], [1], [0, 0, 1, 1], [], []>} : vector<16x2048xbf16>, vector<2048x256xbf16>, vector<16x256xf32> -> vector<16x256xf32>
    %c0_3 = arith.constant 0 : index
    %c0_4 = arith.constant 0 : index
    %4 = vector.load %arg2[%c0_3, %c0_4] : memref<1x256xf32, #tpu.memory_space<vmem>>, vector<1x256xf32>
    %5 = vector.broadcast %4 : vector<1x256xf32> to vector<16x256xf32>
    %6 = arith.addf %3, %5 : vector<16x256xf32>
    %c0_5 = arith.constant 0 : index
    %c0_6 = arith.constant 0 : index
    %7 = vector.load %arg5[%c0_5, %c0_6] : memref<16x256xf32, #tpu.memory_space<vmem>>, vector<16x256xf32>
    tpu.vector_store %arg5[%c0_5, %c0_6], %6 {strides = array<i32>} : memref<16x256xf32, #tpu.memory_space<vmem>>, vector<16x256xf32>,
    %c0_7 = arith.constant 0 : index
    %c0_8 = arith.constant 0 : index
    %8 = vector.load %arg3[%c0_7, %c0_8] : memref<256x128xf32, #tpu.memory_space<vmem>>, vector<256x128xf32>
    %cst_9 = arith.constant dense<0.000000e+00> : vector<16x128xf32>
    %9 = tpu.matmul %6, %8, %cst_9 {dimension_numbers = #tpu.dot_dimension_numbers<[1], [0], [0], [1], [0, 0, 1, 1], [], []>} : vector<16x256xf32>, vector<256x128xf32>, vector<16x128xf32> -> vector<16x128xf32>
    %c0_10 = arith.constant 0 : index
    %c0_11 = arith.constant 0 : index
    %10 = vector.load %arg4[%c0_10, %c0_11] : memref<1x128xf32, #tpu.memory_space<vmem>>, vector<1x128xf32>
    %11 = vector.broadcast %10 : vector<1x128xf32> to vector<16x128xf32>
    %12 = arith.addf %9, %11 : vector<16x128xf32>
    %c0_12 = arith.constant 0 : index
    %c0_13 = arith.constant 0 : index
    %13 = vector.load %arg6[%c0_12, %c0_13] : memref<16x128xf32, #tpu.memory_space<vmem>>, vector<16x128xf32>
    tpu.vector_store %arg6[%c0_12, %c0_13], %12 {strides = array<i32>} : memref<16x128xf32, #tpu.memory_space<vmem>>, vector<16x128xf32>,
    return
  }
}

module attributes {stable_mosaic.version = 11 : i64} {
  func.func @lmmd_kernel(%arg0: memref<8x256xf32, #tpu.memory_space<vmem>>, %arg1: memref<8x256xf32, #tpu.memory_space<vmem>>, %arg2: memref<8x8xf32, #tpu.memory_space<vmem>>, %arg3: memref<8x8xf32, #tpu.memory_space<vmem>>, %arg4: memref<8x8xf32, #tpu.memory_space<vmem>>, %arg5: memref<1x1xf32, #tpu.memory_space<vmem>>) attributes {dimension_semantics = [], scalar_prefetch = 0 : i64, scratch_operands = 0 : i64, tpu.core_type = #tpu.core_type<tc>} {
    %c0 = arith.constant 0 : index
    %c0_0 = arith.constant 0 : index
    %0 = vector.load %arg0[%c0, %c0_0] : memref<8x256xf32, #tpu.memory_space<vmem>>, vector<8x256xf32>
    %c0_1 = arith.constant 0 : index
    %c0_2 = arith.constant 0 : index
    %1 = vector.load %arg1[%c0_1, %c0_2] : memref<8x256xf32, #tpu.memory_space<vmem>>, vector<8x256xf32>
    %cst = arith.constant dense<0.000000e+00> : vector<8x8xf32>
    %2 = tpu.matmul %0, %0, %cst {dimension_numbers = #tpu.dot_dimension_numbers<[1], [1], [0], [0], [0, 0, 1, 0], [], []>} : vector<8x256xf32>, vector<8x256xf32>, vector<8x8xf32> -> vector<8x8xf32>
    %cst_3 = arith.constant dense<0.000000e+00> : vector<8x8xf32>
    %3 = tpu.matmul %1, %1, %cst_3 {dimension_numbers = #tpu.dot_dimension_numbers<[1], [1], [0], [0], [0, 0, 1, 0], [], []>} : vector<8x256xf32>, vector<8x256xf32>, vector<8x8xf32> -> vector<8x8xf32>
    %cst_4 = arith.constant dense<0.000000e+00> : vector<8x8xf32>
    %4 = tpu.matmul %0, %1, %cst_4 {dimension_numbers = #tpu.dot_dimension_numbers<[1], [1], [0], [0], [0, 0, 1, 0], [], []>} : vector<8x256xf32>, vector<8x256xf32>, vector<8x8xf32> -> vector<8x8xf32>
    %5 = arith.mulf %0, %0 : vector<8x256xf32>
    %6 = arith.mulf %1, %1 : vector<8x256xf32>
    %cst_5 = arith.constant 1.000000e+00 : f32
    %7 = vector.broadcast %cst_5 : f32 to vector<1x256xf32>
    %cst_6 = arith.constant dense<0.000000e+00> : vector<8xf32>
    %8 = vector.multi_reduction <add>, %5, %cst_6 [1] : vector<8x256xf32> to vector<8xf32>
    %9 = vector.shape_cast %8 : vector<8xf32> to vector<8x1xf32>
    %cst_7 = arith.constant dense<0.000000e+00> : vector<8xf32>
    %10 = vector.multi_reduction <add>, %6, %cst_7 [1] : vector<8x256xf32> to vector<8xf32>
    %11 = vector.shape_cast %10 : vector<8xf32> to vector<8x1xf32>
    %cst_8 = arith.constant dense<0.000000e+00> : vector<1x8xf32>
    %12 = tpu.matmul %7, %5, %cst_8 {dimension_numbers = #tpu.dot_dimension_numbers<[1], [1], [0], [0], [0, 0, 1, 0], [], []>} : vector<1x256xf32>, vector<8x256xf32>, vector<1x8xf32> -> vector<1x8xf32>
    %cst_9 = arith.constant dense<0.000000e+00> : vector<1x8xf32>
    %13 = tpu.matmul %7, %6, %cst_9 {dimension_numbers = #tpu.dot_dimension_numbers<[1], [1], [0], [0], [0, 0, 1, 0], [], []>} : vector<1x256xf32>, vector<8x256xf32>, vector<1x8xf32> -> vector<1x8xf32>
    %14 = vector.broadcast %9 : vector<8x1xf32> to vector<8x8xf32>
    %15 = vector.broadcast %12 : vector<1x8xf32> to vector<8x8xf32>
    %16 = arith.addf %14, %15 : vector<8x8xf32>
    %cst_10 = arith.constant 2.000000e+00 : f32
    %17 = vector.broadcast %cst_10 : f32 to vector<8x8xf32>
    %18 = arith.mulf %17, %2 : vector<8x8xf32>
    %19 = arith.subf %16, %18 : vector<8x8xf32>
    %cst_11 = arith.constant 0.000000e+00 : f32
    %20 = vector.broadcast %cst_11 : f32 to vector<8x8xf32>
    %21 = arith.maximumf %19, %20 : vector<8x8xf32>
    %22 = vector.broadcast %11 : vector<8x1xf32> to vector<8x8xf32>
    %23 = vector.broadcast %13 : vector<1x8xf32> to vector<8x8xf32>
    %24 = arith.addf %22, %23 : vector<8x8xf32>
    %cst_12 = arith.constant 2.000000e+00 : f32
    %25 = vector.broadcast %cst_12 : f32 to vector<8x8xf32>
    %26 = arith.mulf %25, %3 : vector<8x8xf32>
    %27 = arith.subf %24, %26 : vector<8x8xf32>
    %cst_13 = arith.constant 0.000000e+00 : f32
    %28 = vector.broadcast %cst_13 : f32 to vector<8x8xf32>
    %29 = arith.maximumf %27, %28 : vector<8x8xf32>
    %30 = vector.broadcast %9 : vector<8x1xf32> to vector<8x8xf32>
    %31 = vector.broadcast %13 : vector<1x8xf32> to vector<8x8xf32>
    %32 = arith.addf %30, %31 : vector<8x8xf32>
    %cst_14 = arith.constant 2.000000e+00 : f32
    %33 = vector.broadcast %cst_14 : f32 to vector<8x8xf32>
    %34 = arith.mulf %33, %4 : vector<8x8xf32>
    %35 = arith.subf %32, %34 : vector<8x8xf32>
    %cst_15 = arith.constant 0.000000e+00 : f32
    %36 = vector.broadcast %cst_15 : f32 to vector<8x8xf32>
    %37 = arith.maximumf %35, %36 : vector<8x8xf32>
    %38 = vector.shape_cast %21 : vector<8x8xf32> to vector<1x8x8xf32>
    %cst_16 = arith.constant dense<0.000000e+00> : vector<1xf32>
    %39 = vector.multi_reduction <add>, %38, %cst_16 [1, 2] : vector<1x8x8xf32> to vector<1xf32>
    %40 = vector.shape_cast %39 : vector<1xf32> to vector<1x1x1xf32>
    %41 = vector.extract %40[0, 0, 0] : f32 from vector<1x1x1xf32>
    %42 = vector.shape_cast %29 : vector<8x8xf32> to vector<1x8x8xf32>
    %cst_17 = arith.constant dense<0.000000e+00> : vector<1xf32>
    %43 = vector.multi_reduction <add>, %42, %cst_17 [1, 2] : vector<1x8x8xf32> to vector<1xf32>
    %44 = vector.shape_cast %43 : vector<1xf32> to vector<1x1x1xf32>
    %45 = vector.extract %44[0, 0, 0] : f32 from vector<1x1x1xf32>
    %46 = arith.addf %41, %45 : f32
    %47 = vector.shape_cast %37 : vector<8x8xf32> to vector<1x8x8xf32>
    %cst_18 = arith.constant dense<0.000000e+00> : vector<1xf32>
    %48 = vector.multi_reduction <add>, %47, %cst_18 [1, 2] : vector<1x8x8xf32> to vector<1xf32>
    %49 = vector.shape_cast %48 : vector<1xf32> to vector<1x1x1xf32>
    %50 = vector.extract %49[0, 0, 0] : f32 from vector<1x1x1xf32>
    %cst_19 = arith.constant 2.000000e+00 : f32
    %51 = arith.mulf %cst_19, %50 : f32
    %52 = arith.addf %46, %51 : f32
    %cst_20 = arith.constant 2.400000e+02 : f32
    %53 = arith.divf %52, %cst_20 : f32
    %cst_21 = arith.constant 4.000000e+00 : f32
    %54 = arith.divf %53, %cst_21 : f32
    %cst_22 = arith.constant 1.000000e+00 : f32
    %55 = arith.divf %cst_22, %54 : f32
    %cst_23 = arith.constant 0.000000e+00 : f32
    %56 = vector.broadcast %cst_23 : f32 to vector<8x8xf32>
    %57 = arith.subf %56, %21 : vector<8x8xf32>
    %cst_24 = arith.constant 0.000000e+00 : f32
    %58 = vector.broadcast %cst_24 : f32 to vector<8x8xf32>
    %59 = arith.subf %58, %29 : vector<8x8xf32>
    %cst_25 = arith.constant 0.000000e+00 : f32
    %60 = vector.broadcast %cst_25 : f32 to vector<8x8xf32>
    %61 = arith.subf %60, %37 : vector<8x8xf32>
    %cst_26 = arith.constant 0.000000e+00 : f32
    %62 = vector.broadcast %cst_26 : f32 to vector<8x8xf32>
    %cst_27 = arith.constant 0.000000e+00 : f32
    %63 = vector.broadcast %cst_27 : f32 to vector<8x8xf32>
    %cst_28 = arith.constant 0.000000e+00 : f32
    %64 = vector.broadcast %cst_28 : f32 to vector<8x8xf32>
    %cst_29 = arith.constant 1.000000e+00 : f32
    %65 = arith.mulf %55, %cst_29 : f32
    %66 = vector.broadcast %65 : f32 to vector<8x8xf32>
    %67 = arith.mulf %57, %66 : vector<8x8xf32>
    %68 = math.exp %67 : vector<8x8xf32>
    %69 = arith.addf %62, %68 : vector<8x8xf32>
    %70 = vector.broadcast %65 : f32 to vector<8x8xf32>
    %71 = arith.mulf %59, %70 : vector<8x8xf32>
    %72 = math.exp %71 : vector<8x8xf32>
    %73 = arith.addf %63, %72 : vector<8x8xf32>
    %74 = vector.broadcast %65 : f32 to vector<8x8xf32>
    %75 = arith.mulf %61, %74 : vector<8x8xf32>
    %76 = math.exp %75 : vector<8x8xf32>
    %77 = arith.addf %64, %76 : vector<8x8xf32>
    %cst_30 = arith.constant 5.000000e-01 : f32
    %78 = arith.mulf %55, %cst_30 : f32
    %79 = vector.broadcast %78 : f32 to vector<8x8xf32>
    %80 = arith.mulf %57, %79 : vector<8x8xf32>
    %81 = math.exp %80 : vector<8x8xf32>
    %82 = arith.addf %69, %81 : vector<8x8xf32>
    %83 = vector.broadcast %78 : f32 to vector<8x8xf32>
    %84 = arith.mulf %59, %83 : vector<8x8xf32>
    %85 = math.exp %84 : vector<8x8xf32>
    %86 = arith.addf %73, %85 : vector<8x8xf32>
    %87 = vector.broadcast %78 : f32 to vector<8x8xf32>
    %88 = arith.mulf %61, %87 : vector<8x8xf32>
    %89 = math.exp %88 : vector<8x8xf32>
    %90 = arith.addf %77, %89 : vector<8x8xf32>
    %cst_31 = arith.constant 2.500000e-01 : f32
    %91 = arith.mulf %55, %cst_31 : f32
    %92 = vector.broadcast %91 : f32 to vector<8x8xf32>
    %93 = arith.mulf %57, %92 : vector<8x8xf32>
    %94 = math.exp %93 : vector<8x8xf32>
    %95 = arith.addf %82, %94 : vector<8x8xf32>
    %96 = vector.broadcast %91 : f32 to vector<8x8xf32>
    %97 = arith.mulf %59, %96 : vector<8x8xf32>
    %98 = math.exp %97 : vector<8x8xf32>
    %99 = arith.addf %86, %98 : vector<8x8xf32>
    %100 = vector.broadcast %91 : f32 to vector<8x8xf32>
    %101 = arith.mulf %61, %100 : vector<8x8xf32>
    %102 = math.exp %101 : vector<8x8xf32>
    %103 = arith.addf %90, %102 : vector<8x8xf32>
    %cst_32 = arith.constant 1.250000e-01 : f32
    %104 = arith.mulf %55, %cst_32 : f32
    %105 = vector.broadcast %104 : f32 to vector<8x8xf32>
    %106 = arith.mulf %57, %105 : vector<8x8xf32>
    %107 = math.exp %106 : vector<8x8xf32>
    %108 = arith.addf %95, %107 : vector<8x8xf32>
    %109 = vector.broadcast %104 : f32 to vector<8x8xf32>
    %110 = arith.mulf %59, %109 : vector<8x8xf32>
    %111 = math.exp %110 : vector<8x8xf32>
    %112 = arith.addf %99, %111 : vector<8x8xf32>
    %113 = vector.broadcast %104 : f32 to vector<8x8xf32>
    %114 = arith.mulf %61, %113 : vector<8x8xf32>
    %115 = math.exp %114 : vector<8x8xf32>
    %116 = arith.addf %103, %115 : vector<8x8xf32>
    %cst_33 = arith.constant 6.250000e-02 : f32
    %117 = arith.mulf %55, %cst_33 : f32
    %118 = vector.broadcast %117 : f32 to vector<8x8xf32>
    %119 = arith.mulf %57, %118 : vector<8x8xf32>
    %120 = math.exp %119 : vector<8x8xf32>
    %121 = arith.addf %108, %120 : vector<8x8xf32>
    %122 = vector.broadcast %117 : f32 to vector<8x8xf32>
    %123 = arith.mulf %59, %122 : vector<8x8xf32>
    %124 = math.exp %123 : vector<8x8xf32>
    %125 = arith.addf %112, %124 : vector<8x8xf32>
    %126 = vector.broadcast %117 : f32 to vector<8x8xf32>
    %127 = arith.mulf %61, %126 : vector<8x8xf32>
    %128 = math.exp %127 : vector<8x8xf32>
    %129 = arith.addf %116, %128 : vector<8x8xf32>
    %130 = arith.cmpf one, %121, %121 : vector<8x8xf32>
    %cst_34 = arith.constant 1.000000e+00 : f32
    %cst_35 = arith.constant 0.000000e+00 : f32
    %131 = vector.broadcast %cst_34 : f32 to vector<8x8xf32>
    %132 = vector.broadcast %cst_35 : f32 to vector<8x8xf32>
    %133 = arith.select %130, %131, %132 : vector<8x8xi1>, vector<8x8xf32>
    %134 = vector.shape_cast %133 : vector<8x8xf32> to vector<1x8x8xf32>
    %cst_36 = arith.constant dense<0xFF800000> : vector<1xf32>
    %135 = vector.multi_reduction <maximumf>, %134, %cst_36 [1, 2] : vector<1x8x8xf32> to vector<1xf32>
    %136 = vector.shape_cast %135 : vector<1xf32> to vector<1x1x1xf32>
    %137 = vector.extract %136[0, 0, 0] : f32 from vector<1x1x1xf32>
    %cst_37 = arith.constant 0.000000e+00 : f32
    %138 = arith.cmpf ogt, %137, %cst_37 : f32
    %139 = arith.cmpf one, %125, %125 : vector<8x8xf32>
    %cst_38 = arith.constant 1.000000e+00 : f32
    %cst_39 = arith.constant 0.000000e+00 : f32
    %140 = vector.broadcast %cst_38 : f32 to vector<8x8xf32>
    %141 = vector.broadcast %cst_39 : f32 to vector<8x8xf32>
    %142 = arith.select %139, %140, %141 : vector<8x8xi1>, vector<8x8xf32>
    %143 = vector.shape_cast %142 : vector<8x8xf32> to vector<1x8x8xf32>
    %cst_40 = arith.constant dense<0xFF800000> : vector<1xf32>
    %144 = vector.multi_reduction <maximumf>, %143, %cst_40 [1, 2] : vector<1x8x8xf32> to vector<1xf32>
    %145 = vector.shape_cast %144 : vector<1xf32> to vector<1x1x1xf32>
    %146 = vector.extract %145[0, 0, 0] : f32 from vector<1x1x1xf32>
    %cst_41 = arith.constant 0.000000e+00 : f32
    %147 = arith.cmpf ogt, %146, %cst_41 : f32
    %148 = arith.ori %138, %147 : i1
    %149 = arith.cmpf one, %129, %129 : vector<8x8xf32>
    %cst_42 = arith.constant 1.000000e+00 : f32
    %cst_43 = arith.constant 0.000000e+00 : f32
    %150 = vector.broadcast %cst_42 : f32 to vector<8x8xf32>
    %151 = vector.broadcast %cst_43 : f32 to vector<8x8xf32>
    %152 = arith.select %149, %150, %151 : vector<8x8xi1>, vector<8x8xf32>
    %153 = vector.shape_cast %152 : vector<8x8xf32> to vector<1x8x8xf32>
    %cst_44 = arith.constant dense<0xFF800000> : vector<1xf32>
    %154 = vector.multi_reduction <maximumf>, %153, %cst_44 [1, 2] : vector<1x8x8xf32> to vector<1xf32>
    %155 = vector.shape_cast %154 : vector<1xf32> to vector<1x1x1xf32>
    %156 = vector.extract %155[0, 0, 0] : f32 from vector<1x1x1xf32>
    %cst_45 = arith.constant 0.000000e+00 : f32
    %157 = arith.cmpf ogt, %156, %cst_45 : f32
    %158 = arith.ori %148, %157 : i1
    %c0_46 = arith.constant 0 : index
    %c0_47 = arith.constant 0 : index
    %159 = vector.load %arg2[%c0_46, %c0_47] : memref<8x8xf32, #tpu.memory_space<vmem>>, vector<8x8xf32>
    %160 = arith.mulf %159, %121 : vector<8x8xf32>
    %c0_48 = arith.constant 0 : index
    %c0_49 = arith.constant 0 : index
    %161 = vector.load %arg3[%c0_48, %c0_49] : memref<8x8xf32, #tpu.memory_space<vmem>>, vector<8x8xf32>
    %162 = arith.mulf %161, %125 : vector<8x8xf32>
    %163 = arith.addf %160, %162 : vector<8x8xf32>
    %c0_50 = arith.constant 0 : index
    %c0_51 = arith.constant 0 : index
    %164 = vector.load %arg4[%c0_50, %c0_51] : memref<8x8xf32, #tpu.memory_space<vmem>>, vector<8x8xf32>
    %cst_52 = arith.constant 2.000000e+00 : f32
    %165 = vector.broadcast %cst_52 : f32 to vector<8x8xf32>
    %166 = arith.mulf %165, %164 : vector<8x8xf32>
    %167 = arith.mulf %166, %129 : vector<8x8xf32>
    %168 = arith.subf %163, %167 : vector<8x8xf32>
    %169 = vector.shape_cast %168 : vector<8x8xf32> to vector<1x8x8xf32>
    %cst_53 = arith.constant dense<0.000000e+00> : vector<1xf32>
    %170 = vector.multi_reduction <add>, %169, %cst_53 [1, 2] : vector<1x8x8xf32> to vector<1xf32>
    %171 = vector.shape_cast %170 : vector<1xf32> to vector<1x1x1xf32>
    %172 = vector.extract %171[0, 0, 0] : f32 from vector<1x1x1xf32>
    %cst_54 = arith.constant 0.000000e+00 : f32
    %173 = arith.select %158, %cst_54, %172 : f32
    %174 = vector.broadcast %173 : f32 to vector<1x1xf32>
    %c0_55 = arith.constant 0 : index
    %c0_56 = arith.constant 0 : index
    %175 = vector.load %arg5[%c0_55, %c0_56] : memref<1x1xf32, #tpu.memory_space<vmem>>, vector<1x1xf32>
    tpu.vector_store %arg5[%c0_55, %c0_56], %174 {strides = array<i32>} : memref<1x1xf32, #tpu.memory_space<vmem>>, vector<1x1xf32>,
    return
  }
}

</mosaic_0001>

<bundles_post_ra>
// kernel: _loopnet_forward.3
= control target key start
LH: loop header
LB: loop body
LE: loop exit
PB: predicated region body
PF: predicated region fallthrough
CT: control target
= control target key end

     0   :  { %s742_s0 = inlined_call_operand.vmem [shape: f32[8,256], index: 0, kind: input, shape index: {}]   ;;  %s743_s1 = inlined_call_operand.vmem [shape: f32[8,256], index: 1, kind: input, shape index: {}]   ;;  %s744_s2 = inlined_call_operand.vmem [shape: f32[8,8], index: 2, kind: input, shape index: {}]   ;;  %s745_s3 = inlined_call_operand.vmem [shape: f32[8,8], index: 3, kind: input, shape index: {}]   ;;  %s746_s4 = inlined_call_operand.vmem [shape: f32[8,8], index: 4, kind: input, shape index: {}]   ;;  %s747_s5 = inlined_call_operand.hbm [shape: f32[1,1], index: 5, kind: output, shape index: {}]  }
   0x1   :  { %v22_v0 = vld [vmem:[%s742_s0 + $0x8] sm:$0xff]  ;;  %v21_v2 = vld [vmem:[%s742_s0] sm:$0xff] }
   0x2   :  { %v24_v1 = vld [vmem:[%s743_s1 + $0x8] sm:$0xff]  ;;  %55 = vmatprep.subr.mxu0 %v22_v0  ;;  %v23_v3 = vld [vmem:[%s743_s1] sm:$0xff]  ;;  %v236_v4 = vmul.f32 %v22_v0, %v22_v0 }
   0x3   :  { %125 = vmatprep.subr.mxu1 %v24_v1 }
   0x4   :  { %10 = vsyncpa [#allocation3], 0  ;;  %56 = vmatpush1.xpose.msra.mxu0 %v21_v2  ;;  %126 = vmatpush1.xpose.msra.mxu1 %v23_v3  ;;  %v235_v5 = vmul.f32 %v21_v2, %v21_v2  ;;  %v238_v6 = vmul.f32 %v24_v1, %v24_v1  ;;  %v237_v8 = vmul.f32 %v23_v3, %v23_v3  ;;  %v671_v9 = vmov 1.0   ;;  %s673_s18 = smov [#allocation2]  }
   0x5   :  { %89 = vmatprep.mubr.f32.mxu0 %v22_v0  ;;  %159 = vmatprep.mubr.f32.mxu1 %v24_v1  ;;  %v385_v11 = vlaneseq  ;;  %vm405_vm0 = vcmask 64512   ;;  %s590_s19 = sshll.u32 %s673_s18, 4  ;;  %vm582_vm4 = vcmask 0   ;;  %s591_s19 = int_to_ptr.vmem [resolvable:$true] %s590_s19 }
   0x6   :  { %195 = vmatprep.subr.mxu0 %v24_v1  ;;  %275 = vmatprep.subr.mxu1 %v236_v4  ;;  %v239_v7 = vadd.f32 %v236_v4, %v235_v5  ;;  %v242_v10 = vadd.f32 %v238_v6, %v237_v8  ;;  %s649_s21 = scalar_lea.vmem %s591_s19, 16  ;;  %s653_s22 = scalar_lea.vmem %s591_s19, 32 }
   0x7   :  { %90 = vmatmul.mubr.f32.vlgmr.msra.gmra.mxu0 %v21_v2  ;;  %160 = vmatmul.mubr.f32.vlgmr.msra.gmra.mxu1 %v23_v3  ;;  %v386_v12 = vshrl.u32 %v385_v11, 7  ;;  %p650_p5 = scmp.ne.s32.totalorder %s591_s19, %s649_s21  ;;  %p654_p6 = scmp.lt.s32.totalorder %s591_s19, %s591_s19 }
   0x8   :  { %196 = vmatpush1.xpose.msra.mxu0 %v23_v3  ;;  %276 = vmatpush1.xpose.msra.mxu1 %v235_v5  ;;  %p655_p7 = scmp.lt.s32.totalorder %s653_s22, %s649_s21 }
   0x9   :  { %229 = vmatprep.mubr.f32.mxu0 %v22_v0  ;;  %309 = vmatprep.mubr.f32.mxu1 %v671_v9  ;;  %v387_v15 = vsub.s32 0, %v386_v12 }
   0xa   :  { %345 = vmatprep.subr.mxu0 %v238_v6  ;;  %240 = vadd.xlane.f32.xlu0 %v239_v7  ;;  %p656_p8 = por %p655_p7, %p654_p6 }
   0xb   :  { %230 = vmatmul.mubr.f32.vlgmr.msra.gmra.mxu0 %v21_v2  ;;  %310 = vmatmul.mubr.f32.vlgmr.msra.gmra.mxu1 %v671_v9 }
   0xc   :  { %346 = vmatpush1.xpose.msra.mxu0 %v237_v8  ;;  %379 = vmatprep.mubr.f32.mxu0 %v671_v9  ;;  %p657_p9 = pnand %p656_p8, %p650_p5 }
   0xe   :  { %243 = vadd.xlane.f32.xlu0 %v242_v10 }
   0xf   :  { %380 = vmatmul.mubr.f32.vlgmr.msra.gmra.mxu0 %v671_v9 }
  0x93   :  { %v241_v16 = vpop.xlane.xlu0 %240 }
  0x97   :  { %v244_v27 = vpop.xlane.xlu0 %243 }
  0xc7   :  { %v91_v13 = vpop.f32.mrf.mxu0  ;;  %v161_v14 = vpop.f32.mrf.mxu1 }
  0xc8   :  { %v390_v24 = vmul.f32 2.0, %v91_v13  ;;  %v398_v30 = vmul.f32 2.0, %v161_v14 }
  0xc9   :  { %v93_v17 = vpop.f32.mrf.mxu0  ;;  %v163_v18 = vpop.f32.mrf.mxu1 }
  0xcb   :  { %v231_v19 = vpop.f32.mrf.mxu0  ;;  %v311_v20 = vpop.f32.mrf.mxu1 }
  0xcc   :  { %v388_v21 = vrot.slane %v311_v20, %v387_v15  ;;  %v402_v32 = vmul.f32 2.0, %v231_v19 }
  0xcd   :  { %v313_v22 = vpop.f32.mrf.mxu1  ;;  %v233_v23 = vpop.f32.mrf.mxu0 }
  0xce   :  { %v389_v25 = vadd.f32 %v388_v21, %v241_v16 }
  0xcf   :  { %v381_v26 = vpop.f32.mrf.mxu0 }
  0xd0   :  { %v396_v28 = vrot.slane %v381_v26, %v387_v15  ;;  %v391_v29 = vsub.f32 %v389_v25, %v390_v24 }
  0xd1   :  { %v383_v31 = vpop.f32.mrf.mxu0 }
  0xd2   :  { %v401_v33 = vadd.f32 %v396_v28, %v241_v16  ;;  %v397_v34 = vadd.f32 %v396_v28, %v244_v27  ;;  %v392_v35 = vmax.f32 %v391_v29, 0.0 }
  0xd4   :  { %v399_v36 = vsub.f32 %v397_v34, %v398_v30  ;;  %v406_v37 = vsel %vm405_vm0, %v392_v35, 0.0  ;;  %v403_v38 = vsub.f32 %v401_v33, %v402_v32  ;;  %v448_v2 = vsub.f32 0.0, %v392_v35 }
  0xd5   :  { %407 = vadd.xlane.f32.xlu1 %v406_v37 }
  0xd6   :  { %v404_v39 = vmax.f32 %v403_v38, 0.0  ;;  %v400_v40 = vmax.f32 %v399_v36, 0.0 }
  0xd8   :  { %v427_v41 = vsel %vm405_vm0, %v404_v39, 0.0  ;;  %v416_v42 = vsel %vm405_vm0, %v400_v40, 0.0  ;;  %v450_v3 = vsub.f32 0.0, %v404_v39  ;;  %v449_v4 = vsub.f32 0.0, %v400_v40 }
  0xd9   :  { %428 = vadd.xlane.f32.xlu0 %v427_v41  ;;  %417 = vadd.xlane.f32.xlu1 %v416_v42 }
 0x15e   :  { %v408_v43 = vpop.xlane.xlu1 %407 }
 0x15f   :  { %v409_v44 = vrot.slane %v408_v43, 4 }
 0x161   :  { %v410_v45 = vadd.f32 %v409_v44, %v408_v43 }
 0x162   :  { %v429_v46 = vpop.xlane.xlu0 %428  ;;  %v418_v47 = vpop.xlane.xlu1 %417 }
 0x163   :  { %v411_v48 = vrot.slane %v410_v45, 2  ;;  %v430_v49 = vrot.slane %v429_v46, 4  ;;  %v419_v50 = vrot.slane %v418_v47, 4 }
 0x165   :  { %v431_v51 = vadd.f32 %v430_v49, %v429_v46  ;;  %v420_v52 = vadd.f32 %v419_v50, %v418_v47  ;;  %v412_v53 = vadd.f32 %v411_v48, %v410_v45 }
 0x167   :  { %v432_v54 = vrot.slane %v431_v51, 2  ;;  %v421_v55 = vrot.slane %v420_v52, 2  ;;  %v413_v56 = vrot.slane %v412_v53, 1 }
 0x169   :  { %v414_v57 = vadd.f32 %v413_v56, %v412_v53  ;;  %v422_v58 = vadd.f32 %v421_v55, %v420_v52  ;;  %v433_v59 = vadd.f32 %v432_v54, %v431_v51 }
 0x16b   :  { %598 = vpush %v414_v57  ;;  %v423_v60 = vrot.slane %v422_v58, 1  ;;  %v434_v61 = vrot.slane %v433_v59, 1 }
 0x16d   :  { %v424_v62 = vadd.f32 %v423_v60, %v422_v58  ;;  %v435_v63 = vadd.f32 %v434_v61, %v433_v59  ;;  %v566_v60 = vld [vmem:[%s746_s4] sm:$0xff] }
 0x16f   :  { %600 = vpush %v424_v62 }
 0x170   :  { %602 = vpush %v435_v63  ;;  %v561_v63 = vld [vmem:[%s744_s2] sm:$0xff] }
 0x19c   :  { %s599_s0 = spop %598 }
 0x1a0   :  { %s601_s1 = spop %600 }
 0x1a1   :  { %s426_s26 = sadd.f32 %s601_s1, %s599_s0  ;;  %s603_s27 = spop %602 }
 0x1a2   :  { %s437_s28 = smul.f32 2.0, %s603_s27 }
 0x1a4   :  { %s438_s29 = sadd.f32 %s437_s28, %s426_s26 }
 0x1a6   :  { %s441_s30 = smul.f32 0.004166667, %s438_s29 }
 0x1a8   :  { %s444_s6 = smul.f32 0.25, %s441_s30 }
 0x1aa   :  { %v445_v0 = vstv %s444_s6 }
 0x1ab   :  { %617 = vrcp.f32 %v445_v0 }
 0x1b8   :  { %v618_v1 = vpop.eup %617 }
 0x1b9   :  { %604 = vpush %v618_v1 }
 0x1ea   :  { %s719_s7 = spop %604 }
 0x1eb   :  { %v451_v5 = vstv %s719_s7  ;;  %s464_s8 = smul.f32 0.5, %s719_s7 }
 0x1ec   :  { %v452_v6 = vmul.f32 %v451_v5, %v448_v2  ;;  %v456_v7 = vmul.f32 %v451_v5, %v449_v4  ;;  %v460_v8 = vmul.f32 %v451_v5, %v450_v3  ;;  %s478_s9 = smul.f32 0.25, %s719_s7  ;;  %v567_v5 = vmul.f32 2.0, %v566_v60 }
 0x1ed   :  { %v465_v9 = vstv %s464_s8  ;;  %s492_s10 = smul.f32 0.125, %s719_s7 }
 0x1ee   :  { %v453_v10 = vmul.f32 1.442695, %v452_v6  ;;  %v457_v11 = vmul.f32 1.442695, %v456_v7  ;;  %v461_v12 = vmul.f32 1.442695, %v460_v8  ;;  %v466_v13 = vmul.f32 %v465_v9, %v448_v2 }
 0x1ef   :  { %v470_v14 = vmul.f32 %v465_v9, %v449_v4  ;;  %v474_v15 = vmul.f32 %v465_v9, %v450_v3  ;;  %v479_v16 = vstv %s478_s9  ;;  %v493_v17 = vstv %s492_s10  ;;  %s506_s11 = smul.f32 0.0625, %s719_s7 }
 0x1f0   :  { %619 = vpow2.f32 %v453_v10  ;;  %v467_v18 = vmul.f32 1.442695, %v466_v13  ;;  %v480_v19 = vmul.f32 %v479_v16, %v448_v2  ;;  %v484_v20 = vmul.f32 %v479_v16, %v449_v4 }
 0x1f1   :  { %621 = vpow2.f32 %v457_v11  ;;  %v471_v21 = vmul.f32 1.442695, %v470_v14  ;;  %v475_v22 = vmul.f32 1.442695, %v474_v15  ;;  %v488_v23 = vmul.f32 %v479_v16, %v450_v3 }
 0x1f2   :  { %623 = vpow2.f32 %v461_v12  ;;  %v481_v24 = vmul.f32 1.442695, %v480_v19  ;;  %v494_v25 = vmul.f32 %v493_v17, %v448_v2  ;;  %v485_v26 = vmul.f32 1.442695, %v484_v20 }
 0x1f3   :  { %625 = vpow2.f32 %v467_v18  ;;  %v498_v27 = vmul.f32 %v493_v17, %v449_v4  ;;  %v502_v28 = vmul.f32 %v493_v17, %v450_v3  ;;  %v489_v29 = vmul.f32 1.442695, %v488_v23 }
 0x1f4   :  { %627 = vpow2.f32 %v471_v21  ;;  %v507_v30 = vstv %s506_s11  ;;  %v495_v31 = vmul.f32 1.442695, %v494_v25  ;;  %v672_v8 = vmov 0.0  }
 0x1f5   :  { %629 = vpow2.f32 %v475_v22  ;;  %v508_v32 = vmul.f32 %v507_v30, %v448_v2  ;;  %v499_v33 = vmul.f32 1.442695, %v498_v27  ;;  %v512_v34 = vmul.f32 %v507_v30, %v449_v4  ;;  %v563_v2 = vld [vmem:[%s745_s3] sm:$0xff] }
 0x1f6   :  { %631 = vpow2.f32 %v481_v24  ;;  %v516_v35 = vmul.f32 %v507_v30, %v450_v3  ;;  %v503_v36 = vmul.f32 1.442695, %v502_v28 }
 0x1f7   :  { %633 = vpow2.f32 %v485_v26  ;;  %v509_v37 = vmul.f32 1.442695, %v508_v32  ;;  %v513_v38 = vmul.f32 1.442695, %v512_v34 }
 0x1f8   :  { %635 = vpow2.f32 %v489_v29  ;;  %v517_v39 = vmul.f32 1.442695, %v516_v35 }
 0x1f9   :  { %637 = vpow2.f32 %v495_v31 }
 0x1fa   :  { %639 = vpow2.f32 %v499_v33 }
 0x1fb   :  { %641 = vpow2.f32 %v503_v36 }
 0x1fc   :  { %643 = vpow2.f32 %v509_v37 }
 0x1fd   :  { %v620_v40 = vpop.eup %619  ;;  %645 = vpow2.f32 %v513_v38 }
 0x1fe   :  { %v622_v41 = vpop.eup %621  ;;  %647 = vpow2.f32 %v517_v39 }
 0x1ff   :  { %v624_v42 = vpop.eup %623 }
 0x200   :  { %v626_v43 = vpop.eup %625 }
 0x201   :  { %v628_v44 = vpop.eup %627  ;;  %v469_v45 = vadd.f32 %v626_v43, %v620_v40 }
 0x202   :  { %v630_v46 = vpop.eup %629  ;;  %v473_v47 = vadd.f32 %v628_v44, %v622_v41 }
 0x203   :  { %v632_v48 = vpop.eup %631  ;;  %v477_v49 = vadd.f32 %v630_v46, %v624_v42 }
 0x204   :  { %v634_v50 = vpop.eup %633  ;;  %v483_v51 = vadd.f32 %v632_v48, %v469_v45 }
 0x205   :  { %v636_v52 = vpop.eup %635  ;;  %v487_v53 = vadd.f32 %v634_v50, %v473_v47 }
 0x206   :  { %v638_v54 = vpop.eup %637  ;;  %v491_v55 = vadd.f32 %v636_v52, %v477_v49 }
 0x207   :  { %v640_v56 = vpop.eup %639  ;;  %v497_v57 = vadd.f32 %v638_v54, %v483_v51 }
 0x208   :  { %v642_v58 = vpop.eup %641  ;;  %v501_v59 = vadd.f32 %v640_v56, %v487_v53 }
 0x209   :  { %v644_v61 = vpop.eup %643  ;;  %v505_v62 = vadd.f32 %v642_v58, %v491_v55 }
 0x20a   :  { %v646_v0 = vpop.eup %645  ;;  %v511_v1 = vadd.f32 %v644_v61, %v497_v57 }
 0x20b   :  { %v648_v3 = vpop.eup %647  ;;  %v515_v4 = vadd.f32 %v646_v0, %v501_v59 }
 0x20c   :  { %vm520_vm1 = vcmp.ne.f32.partialorder %v511_v1, %v511_v1  ;;  %v519_v6 = vadd.f32 %v648_v3, %v505_v62  ;;  %v562_v7 = vmul.f32 %v561_v63, %v511_v1 }
 0x20d   :  { %vm533_vm2 = vcmp.ne.f32.partialorder %v515_v4, %v515_v4  ;;  %v521_v9 = vsel %vm520_vm1, 1.0, %v672_v8  ;;  %v564_v10 = vmul.f32 %v563_v2, %v515_v4 }
 0x20e   :  { %v534_v11 = vsel %vm533_vm2, 1.0, %v672_v8  ;;  %v522_v12 = vsel %vm405_vm0, %v521_v9, -inf  ;;  %vm547_vm3 = vcmp.ne.f32.partialorder %v519_v6, %v519_v6  ;;  %v568_v15 = vmul.f32 %v567_v5, %v519_v6 }
 0x20f   :  { %v535_v13 = vsel %vm405_vm0, %v534_v11, -inf  ;;  %523 = vmax.xlane.f32.xlu1 %v522_v12  ;;  %v565_v14 = vadd.f32 %v564_v10, %v562_v7  ;;  %v548_v16 = vsel %vm547_vm3, 1.0, %v672_v8 }
 0x210   :  { %536 = vmax.xlane.f32.xlu0 %v535_v13  ;;  %v549_v18 = vsel %vm405_vm0, %v548_v16, -inf }
 0x211   :  { %v569_v17 = vsub.f32 %v565_v14, %v568_v15 }
 0x213   :  { %v570_v19 = vsel %vm405_vm0, %v569_v17, 0.0  ;;  %550 = vmax.xlane.f32.xlu1 %v549_v18 }
 0x214   :  { %571 = vadd.xlane.f32.xlu0 %v570_v19 }
 0x298   :  { %v524_v20 = vpop.xlane.xlu1 %523 }
 0x299   :  { %v537_v21 = vpop.xlane.xlu0 %536  ;;  %v525_v22 = vrot.slane %v524_v20, 4 }
 0x29a   :  { %v538_v23 = vrot.slane %v537_v21, 4 }
 0x29b   :  { %v526_v24 = vmax.f32 %v524_v20, %v525_v22 }
 0x29c   :  { %v539_v25 = vmax.f32 %v537_v21, %v538_v23  ;;  %v551_v26 = vpop.xlane.xlu1 %550 }
 0x29d   :  { %v527_v27 = vrot.slane %v526_v24, 2  ;;  %v572_v28 = vpop.xlane.xlu0 %571  ;;  %v552_v29 = vrot.slane %v551_v26, 4 }
 0x29e   :  { %v540_v30 = vrot.slane %v539_v25, 2  ;;  %v573_v31 = vrot.slane %v572_v28, 4 }
 0x29f   :  { %v553_v32 = vmax.f32 %v551_v26, %v552_v29  ;;  %v528_v33 = vmax.f32 %v526_v24, %v527_v27 }
 0x2a0   :  { %v574_v34 = vadd.f32 %v573_v31, %v572_v28  ;;  %v541_v35 = vmax.f32 %v539_v25, %v540_v30 }
 0x2a1   :  { %v554_v36 = vrot.slane %v553_v32, 2  ;;  %v529_v37 = vrot.slane %v528_v33, 1 }
 0x2a2   :  { %v575_v38 = vrot.slane %v574_v34, 2  ;;  %v542_v39 = vrot.slane %v541_v35, 1 }
 0x2a3   :  { %v555_v40 = vmax.f32 %v553_v32, %v554_v36  ;;  %v530_v41 = vmax.f32 %v528_v33, %v529_v37 }
 0x2a4   :  { %v576_v42 = vadd.f32 %v575_v38, %v574_v34  ;;  %v543_v43 = vmax.f32 %v541_v35, %v542_v39 }
 0x2a5   :  { %606 = vpush %v530_v41  ;;  %v556_v44 = vrot.slane %v555_v40, 1 }
 0x2a6   :  { %608 = vpush %v543_v43  ;;  %v577_v45 = vrot.slane %v576_v42, 1 }
 0x2a7   :  { %v557_v46 = vmax.f32 %v555_v40, %v556_v44 }
 0x2a8   :  { %v578_v47 = vadd.f32 %v577_v45, %v576_v42 }
 0x2a9   :  { %610 = vpush %v557_v46 }
 0x2aa   :  { %612 = vpush %v578_v47 }
 0x2d6   :  { %s607_s2 = spop %606 }
 0x2d7   :  { %p532_p0 = scmp.gt.f32.partialorder %s607_s2, 0.0  ;;  %s609_s3 = spop %608 }
 0x2d8   :  { %p545_p1 = scmp.gt.f32.partialorder %s609_s3, 0.0 }
 0x2da   :  { %s611_s4 = spop %610  ;;  %p546_p2 = por %p545_p1, %p532_p0 }
 0x2db   :  { %p559_p3 = scmp.gt.f32.partialorder %s611_s4, 0.0  ;;  %s613_s20 = spop %612 }
 0x2dd   :  { %p560_p4 = por %p559_p3, %p546_p2 }
 0x2df   :  { %s749_s20 = smov (%p560_p4, %s613_s20), 0.0 }
 0x2e0   :  { %v581_v48 = vstv %s749_s20 }
 0x2e1   :  { %583 = vst.msk [vmem:[#allocation2] sm:$0x1] %vm582_vm4, %v581_v48 }
 0x2e2   :  { %660 = shalt.err (!%p657_p9)
}
 0x2e3   :  { %593 = dma.vmem_to_hbm [thread:$0]  %s591_s19, 16, %s747_s5, [#allocation3]  }
 0x2e4   :  { %669 = dma.done.wait [#allocation3], 16  }
 0x2e5   :  { %670 = vsyncadd [#allocation3], 4294967280 }
 0x2e6   :  { %597 = vsyncpa [#allocation3], 1 }

// kernel: _loopnet_forward.2
= control target key start
LH: loop header
LB: loop body
LE: loop exit
PB: predicated region body
PF: predicated region fallthrough
CT: control target
= control target key end

     0   :  { %12 = vsyncpa [#allocation3], 0  ;;  %s2841_s21 = smov [#allocation2]   ;;  %s3098_s0 = inlined_call_operand.vmem [shape: f32[16,2048], index: 0, kind: input, shape index: {}]   ;;  %s3099_s1 = inlined_call_operand.hbm [shape: bf16[2048,256], index: 1, kind: input, shape index: {}]   ;;  %s3100_s2 = inlined_call_operand.vmem [shape: f32[1,256], index: 2, kind: input, shape index: {}]   ;;  %s3101_s3 = inlined_call_operand.vmem [shape: f32[256,128], index: 3, kind: input, shape index: {}]   ;;  %s3102_s4 = inlined_call_operand.vmem [shape: f32[1,128], index: 4, kind: input, shape index: {}]   ;;  %s3103_s5 = inlined_call_operand.vmem [shape: f32[16,256], index: 5, kind: output, shape index: {0}]   ;;  %s3104_s6 = inlined_call_operand.vmem [shape: f32[16,128], index: 6, kind: output, shape index: {1}]  }
   0x1   :  { %s20_s22 = sshll.u32 %s2841_s21, 4  ;;  %s21_s22 = int_to_ptr.vmem [resolvable:$true] %s20_s22 }
   0x2   :  { %s2827_s23 = scalar_lea.vmem %s21_s22, 32768  ;;  %p2832_p1 = scmp.lt.s32.totalorder %s21_s22, %s21_s22 }
   0x3   :  { %p2828_p0 = scmp.ne.s32.totalorder %s21_s22, %s2827_s23  ;;  %p2833_p2 = scmp.lt.s32.totalorder %s2827_s23, %s2827_s23 }
   0x5   :  { %p2834_p3 = por %p2833_p2, %p2832_p1 }
   0x7   :  { %p2835_p4 = pnand %p2834_p3, %p2828_p0 }
   0x9   :  { %2838 = shalt.err (!%p2835_p4)
}
   0xa   :  { %s2842_s24 = smov 128   ;;  %s2843_s25 = smov 8  }
   0xb   :  { %26 = dma.hbm_to_vmem [thread:$0]  %s3099_s1, 32768, %s21_s22, [#allocation3], %s2842_s24, %s2842_s24, %s2843_s25  }
   0xc   :  { %2839 = dma.done.wait [#allocation3], 32768  }
   0xd   :  { %2840 = vsyncadd [#allocation3], 4294934528  ;;  %v2435_v0 = vld [vmem:[#allocation2 + $0x74] ss:$8 sps:$4 sm:$0xff]   ;;  %v2439_v2 = vld [vmem:[#allocation2 + $0x70] ss:$8 sps:$4 sm:$0xff]  }
   0xe   :  { %v2437_v1 = vld [vmem:[#allocation2 + $0x174] ss:$8 sps:$4 sm:$0xff]   ;;  %1632 = vmatprep.subr.bf16.mxu0 %v2435_v0  ;;  %v2440_v3 = vld [vmem:[#allocation2 + $0x170] ss:$8 sps:$4 sm:$0xff]   ;;  %v2441_v4 = vld [vmem:[#allocation2 + $0x64] ss:$8 sps:$4 sm:$0xff]  }
   0xf   :  { %1675 = vmatprep.subr.bf16.mxu1 %v2437_v1  ;;  %1633 = vmatpush1.bf16.msra.mxu0 %v2439_v2  ;;  %v2443_v5 = vld [vmem:[#allocation2 + $0x164] ss:$8 sps:$4 sm:$0xff]   ;;  %v2445_v6 = vld [vmem:[#allocation2 + $0x60] ss:$8 sps:$4 sm:$0xff]   ;;  %v2447_v8 = vld [vmem:[#allocation2 + $0x54] ss:$8 sps:$4 sm:$0xff]  }
  0x10   :  { %1676 = vmatpush1.bf16.msra.mxu1 %v2440_v3  ;;  %1634 = vmatprep.subr.bf16.mxu0 %v2441_v4  ;;  %v2446_v7 = vld [vmem:[#allocation2 + $0x160] ss:$8 sps:$4 sm:$0xff]   ;;  %v2449_v9 = vld [vmem:[#allocation2 + $0x154] ss:$8 sps:$4 sm:$0xff]   ;;  %v2451_v10 = vld [vmem:[#allocation2 + $0x50] ss:$8 sps:$4 sm:$0xff]  }
  0x11   :  { %1677 = vmatprep.subr.bf16.mxu1 %v2443_v5  ;;  %v2452_v11 = vld [vmem:[#allocation2 + $0x150] ss:$8 sps:$4 sm:$0xff]   ;;  %v2453_v12 = vld [vmem:[#allocation2 + $0x44] ss:$8 sps:$4 sm:$0xff]   ;;  %v2457_v14 = vld [vmem:[#allocation2 + $0x40] ss:$8 sps:$4 sm:$0xff]  }
  0x12   :  { %v2455_v13 = vld [vmem:[#allocation2 + $0x144] ss:$8 sps:$4 sm:$0xff]   ;;  %v2458_v15 = vld [vmem:[#allocation2 + $0x140] ss:$8 sps:$4 sm:$0xff]   ;;  %v2459_v16 = vld [vmem:[#allocation2 + $0x34] ss:$8 sps:$4 sm:$0xff]  }
  0x13   :  { %1635 = vmatpush1.bf16.msra.mxu0 %v2445_v6  ;;  %v2461_v17 = vld [vmem:[#allocation2 + $0x134] ss:$8 sps:$4 sm:$0xff]   ;;  %v2463_v18 = vld [vmem:[#allocation2 + $0x30] ss:$8 sps:$4 sm:$0xff]   ;;  %v2465_v20 = vld [vmem:[#allocation2 + $0x24] ss:$8 sps:$4 sm:$0xff]  }
  0x14   :  { %1678 = vmatpush1.bf16.msra.mxu1 %v2446_v7  ;;  %1636 = vmatprep.subr.bf16.mxu0 %v2447_v8  ;;  %v2464_v19 = vld [vmem:[#allocation2 + $0x130] ss:$8 sps:$4 sm:$0xff]   ;;  %v2467_v21 = vld [vmem:[#allocation2 + $0x124] ss:$8 sps:$4 sm:$0xff]   ;;  %v2469_v22 = vld [vmem:[#allocation2 + $0x20] ss:$8 sps:$4 sm:$0xff]  }
  0x15   :  { %1679 = vmatprep.subr.bf16.mxu1 %v2449_v9  ;;  %v2470_v23 = vld [vmem:[#allocation2 + $0x120] ss:$8 sps:$4 sm:$0xff]   ;;  %v2471_v24 = vld [vmem:[#allocation2 + $0x14] ss:$8 sps:$4 sm:$0xff]   ;;  %v2475_v26 = vld [vmem:[#allocation2 + $0x10] ss:$8 sps:$4 sm:$0xff]  }
  0x16   :  { %v2473_v25 = vld [vmem:[#allocation2 + $0x114] ss:$8 sps:$4 sm:$0xff]   ;;  %v2476_v27 = vld [vmem:[#allocation2 + $0x110] ss:$8 sps:$4 sm:$0xff]   ;;  %v2477_v28 = vld [vmem:[#allocation2 + $0x4] ss:$8 sps:$4 sm:$0xff]  }
  0x17   :  { %1637 = vmatpush1.bf16.msra.mxu0 %v2451_v10  ;;  %v2479_v29 = vld [vmem:[#allocation2 + $0x104] ss:$8 sps:$4 sm:$0xff]   ;;  %v2481_v30 = vld [vmem:[#allocation2] ss:$8 sps:$4 sm:$0xff]   ;;  %v2483_v32 = vld [vmem:[#allocation2 + $0xf4] ss:$8 sps:$4 sm:$0xff]  }
  0x18   :  { %1680 = vmatpush1.bf16.msra.mxu1 %v2452_v11  ;;  %1638 = vmatprep.subr.bf16.mxu0 %v2453_v12  ;;  %v2482_v31 = vld [vmem:[#allocation2 + $0x100] ss:$8 sps:$4 sm:$0xff]   ;;  %v2485_v33 = vld [vmem:[#allocation2 + $0x1f4] ss:$8 sps:$4 sm:$0xff]   ;;  %v2487_v34 = vld [vmem:[#allocation2 + $0xf0] ss:$8 sps:$4 sm:$0xff]  }
  0x19   :  { %1681 = vmatprep.subr.bf16.mxu1 %v2455_v13  ;;  %v2488_v35 = vld [vmem:[#allocation2 + $0x1f0] ss:$8 sps:$4 sm:$0xff]   ;;  %v2489_v36 = vld [vmem:[#allocation2 + $0xe4] ss:$8 sps:$4 sm:$0xff]   ;;  %v2493_v38 = vld [vmem:[#allocation2 + $0xe0] ss:$8 sps:$4 sm:$0xff]  }
  0x1a   :  { %v2491_v37 = vld [vmem:[#allocation2 + $0x1e4] ss:$8 sps:$4 sm:$0xff]   ;;  %v2494_v39 = vld [vmem:[#allocation2 + $0x1e0] ss:$8 sps:$4 sm:$0xff]   ;;  %v2495_v40 = vld [vmem:[#allocation2 + $0xd4] ss:$8 sps:$4 sm:$0xff]  }
  0x1b   :  { %1639 = vmatpush1.bf16.msra.mxu0 %v2457_v14  ;;  %v2497_v41 = vld [vmem:[#allocation2 + $0x1d4] ss:$8 sps:$4 sm:$0xff]   ;;  %v2499_v42 = vld [vmem:[#allocation2 + $0xd0] ss:$8 sps:$4 sm:$0xff]   ;;  %v2501_v44 = vld [vmem:[#allocation2 + $0xc4] ss:$8 sps:$4 sm:$0xff]  }
  0x1c   :  { %1682 = vmatpush1.bf16.msra.mxu1 %v2458_v15  ;;  %1640 = vmatprep.subr.bf16.mxu0 %v2459_v16  ;;  %v2500_v43 = vld [vmem:[#allocation2 + $0x1d0] ss:$8 sps:$4 sm:$0xff]   ;;  %v2503_v45 = vld [vmem:[#allocation2 + $0x1c4] ss:$8 sps:$4 sm:$0xff]   ;;  %v2505_v50 = vld [vmem:[#allocation2 + $0xc0] ss:$8 sps:$4 sm:$0xff]  }
  0x1d   :  { %1683 = vmatprep.subr.bf16.mxu1 %v2461_v17  ;;  %v37_v46 = vld [vmem:[%s3098_s0 + $0x8] sm:$0xff]  ;;  %v39_v48 = vld [vmem:[%s3098_s0 + $0x18] sm:$0xff]  ;;  %v36_v6 = vld [vmem:[%s3098_s0] sm:$0xff] }
  0x1e   :  { %v53_v47 = vld [vmem:[%s3098_s0 + $0x88] sm:$0xff]  ;;  %v55_v49 = vld [vmem:[%s3098_s0 + $0x98] sm:$0xff]  ;;  %v52_v7 = vld [vmem:[%s3098_s0 + $0x80] sm:$0xff] }
  0x1f   :  { %1641 = vmatpush1.bf16.msra.mxu0 %v2463_v18  ;;  %v2506_v51 = vld [vmem:[#allocation2 + $0x1c0] ss:$8 sps:$4 sm:$0xff]   ;;  %v2507_v52 = vld [vmem:[#allocation2 + $0xb4] ss:$8 sps:$4 sm:$0xff]   ;;  %v69_v53 = vpack.c.bf16 %v53_v47, %v37_v46  ;;  %v71_v54 = vpack.c.bf16 %v55_v49, %v39_v48  ;;  %v2511_v56 = vld [vmem:[#allocation2 + $0xb0] ss:$8 sps:$4 sm:$0xff]   ;;  %v68_v12 = vpack.c.bf16 %v52_v7, %v36_v6 }
  0x20   :  { %1684 = vmatpush1.bf16.msra.mxu1 %v2464_v19  ;;  %1642 = vmatprep.subr.bf16.mxu0 %v2465_v20  ;;  %v2509_v55 = vld [vmem:[#allocation2 + $0x1b4] ss:$8 sps:$4 sm:$0xff]   ;;  %v2512_v57 = vld [vmem:[#allocation2 + $0x1b0] ss:$8 sps:$4 sm:$0xff]   ;;  %v2513_v58 = vld [vmem:[#allocation2 + $0xa4] ss:$8 sps:$4 sm:$0xff]  }
  0x21   :  { %1685 = vmatprep.subr.bf16.mxu1 %v2467_v21  ;;  %1664 = vmatprep.mubr.bf16.mxu0 %v69_v53  ;;  %v2515_v59 = vld [vmem:[#allocation2 + $0x1a4] ss:$8 sps:$4 sm:$0xff]   ;;  %v2517_v60 = vld [vmem:[#allocation2 + $0xa0] ss:$8 sps:$4 sm:$0xff]   ;;  %v2519_v62 = vld [vmem:[#allocation2 + $0x94] ss:$8 sps:$4 sm:$0xff]  }
  0x22   :  { %1707 = vmatprep.mubr.bf16.mxu1 %v71_v54  ;;  %v2518_v61 = vld [vmem:[#allocation2 + $0x1a0] ss:$8 sps:$4 sm:$0xff]   ;;  %v2521_v63 = vld [vmem:[#allocation2 + $0x194] ss:$8 sps:$4 sm:$0xff]   ;;  %v2523_v0 = vld [vmem:[#allocation2 + $0x90] ss:$8 sps:$4 sm:$0xff]  }
  0x23   :  { %1643 = vmatpush1.bf16.msra.mxu0 %v2469_v22  ;;  %v2524_v1 = vld [vmem:[#allocation2 + $0x190] ss:$8 sps:$4 sm:$0xff]   ;;  %v2525_v2 = vld [vmem:[#allocation2 + $0x84] ss:$8 sps:$4 sm:$0xff]   ;;  %v2529_v4 = vld [vmem:[#allocation2 + $0x80] ss:$8 sps:$4 sm:$0xff]  }
  0x24   :  { %1686 = vmatpush1.bf16.msra.mxu1 %v2470_v23  ;;  %1644 = vmatprep.subr.bf16.mxu0 %v2471_v24  ;;  %v2527_v3 = vld [vmem:[#allocation2 + $0x184] ss:$8 sps:$4 sm:$0xff]   ;;  %v2530_v5 = vld [vmem:[#allocation2 + $0x180] ss:$8 sps:$4 sm:$0xff]   ;;  %v38_v8 = vld [vmem:[%s3098_s0 + $0x10] sm:$0xff] }
  0x25   :  { %1687 = vmatprep.subr.bf16.mxu1 %v2473_v25  ;;  %v54_v9 = vld [vmem:[%s3098_s0 + $0x90] sm:$0xff]  ;;  %v2539_v16 = vld [vmem:[#allocation2 + $0x264] ss:$8 sps:$4 sm:$0xff]   ;;  %v2537_v18 = vld [vmem:[#allocation2 + $0x260] ss:$8 sps:$4 sm:$0xff]  }
  0x26   :  { %v2533_v10 = vld [vmem:[#allocation2 + $0x274] ss:$8 sps:$4 sm:$0xff]   ;;  %v70_v13 = vpack.c.bf16 %v54_v9, %v38_v8  ;;  %v2531_v14 = vld [vmem:[#allocation2 + $0x270] ss:$8 sps:$4 sm:$0xff]   ;;  %v2542_v17 = vld [vmem:[#allocation2 + $0x364] ss:$8 sps:$4 sm:$0xff]  }
  0x27   :  { %1645 = vmatpush1.bf16.msra.mxu0 %v2475_v26  ;;  %v2536_v11 = vld [vmem:[#allocation2 + $0x374] ss:$8 sps:$4 sm:$0xff]   ;;  %v2534_v15 = vld [vmem:[#allocation2 + $0x370] ss:$8 sps:$4 sm:$0xff]   ;;  %v2540_v19 = vld [vmem:[#allocation2 + $0x360] ss:$8 sps:$4 sm:$0xff]  }
  0x28   :  { %1688 = vmatpush1.bf16.msra.mxu1 %v2476_v27  ;;  %1646 = vmatprep.subr.bf16.mxu0 %v2477_v28  ;;  %v2545_v20 = vld [vmem:[#allocation2 + $0x254] ss:$8 sps:$4 sm:$0xff]   ;;  %v2543_v22 = vld [vmem:[#allocation2 + $0x250] ss:$8 sps:$4 sm:$0xff]   ;;  %v2551_v24 = vld [vmem:[#allocation2 + $0x244] ss:$8 sps:$4 sm:$0xff]  }
  0x29   :  { %1689 = vmatprep.subr.bf16.mxu1 %v2479_v29  ;;  %v2548_v21 = vld [vmem:[#allocation2 + $0x354] ss:$8 sps:$4 sm:$0xff]   ;;  %v2546_v23 = vld [vmem:[#allocation2 + $0x350] ss:$8 sps:$4 sm:$0xff]   ;;  %v2554_v25 = vld [vmem:[#allocation2 + $0x344] ss:$8 sps:$4 sm:$0xff]  }
  0x2a   :  { %v2549_v26 = vld [vmem:[#allocation2 + $0x240] ss:$8 sps:$4 sm:$0xff]   ;;  %v2557_v28 = vld [vmem:[#allocation2 + $0x234] ss:$8 sps:$4 sm:$0xff]   ;;  %v2582_v53 = vld [vmem:[#allocation2 + $0x3f0] ss:$8 sps:$4 sm:$0xff]  }
  0x2b   :  { %1647 = vmatpush1.bf16.msra.mxu0 %v2481_v30  ;;  %v2552_v27 = vld [vmem:[#allocation2 + $0x340] ss:$8 sps:$4 sm:$0xff]   ;;  %v2560_v29 = vld [vmem:[#allocation2 + $0x334] ss:$8 sps:$4 sm:$0xff]   ;;  %v2555_v30 = vld [vmem:[#allocation2 + $0x230] ss:$8 sps:$4 sm:$0xff]  }
  0x2c   :  { %1690 = vmatpush1.bf16.msra.mxu1 %v2482_v31  ;;  %1648 = vmatprep.subr.bf16.mxu0 %v2483_v32  ;;  %v2558_v31 = vld [vmem:[#allocation2 + $0x330] ss:$8 sps:$4 sm:$0xff]   ;;  %v2563_v32 = vld [vmem:[#allocation2 + $0x224] ss:$8 sps:$4 sm:$0xff]   ;;  %v2573_v48 = vld [vmem:[#allocation2 + $0x200] ss:$8 sps:$4 sm:$0xff]  }
  0x2d   :  { %1691 = vmatprep.subr.bf16.mxu1 %v2485_v33  ;;  %v2566_v33 = vld [vmem:[#allocation2 + $0x324] ss:$8 sps:$4 sm:$0xff]   ;;  %v59_v46 = vld [vmem:[%s3098_s0 + $0xb8] sm:$0xff]  ;;  %v2576_v49 = vld [vmem:[#allocation2 + $0x300] ss:$8 sps:$4 sm:$0xff]  }
  0x2e   :  { %v2587_v54 = vld [vmem:[#allocation2 + $0x2e4] ss:$8 sps:$4 sm:$0xff]   ;;  %v2609_v8 = vld [vmem:[#allocation2 + $0x2a0] ss:$8 sps:$4 sm:$0xff]  }
  0x2f   :  { %1649 = vmatpush2.bf16.msra.mxu0 %v2487_v34  ;;  %v2561_v34 = vld [vmem:[#allocation2 + $0x220] ss:$8 sps:$4 sm:$0xff]   ;;  %v2611_v6 = vld [vmem:[#allocation2 + $0x2a4] ss:$8 sps:$4 sm:$0xff]  }
  0x30   :  { %1692 = vmatpush2.bf16.msra.mxu1 %v2488_v35  ;;  %1650 = vmatprep.subr.bf16.mxu0 %v2489_v36  ;;  %v2564_v35 = vld [vmem:[#allocation2 + $0x320] ss:$8 sps:$4 sm:$0xff]   ;;  %v2569_v36 = vld [vmem:[#allocation2 + $0x214] ss:$8 sps:$4 sm:$0xff]   ;;  %v2614_v7 = vld [vmem:[#allocation2 + $0x3a4] ss:$8 sps:$4 sm:$0xff]  }
  0x31   :  { %1693 = vmatprep.subr.bf16.mxu1 %v2491_v37  ;;  %v2572_v37 = vld [vmem:[#allocation2 + $0x314] ss:$8 sps:$4 sm:$0xff]   ;;  %v2612_v9 = vld [vmem:[#allocation2 + $0x3a0] ss:$8 sps:$4 sm:$0xff]  }
  0x33   :  { %1651 = vmatpush2.bf16.msra.mxu0 %v2493_v38  ;;  %v2567_v38 = vld [vmem:[#allocation2 + $0x210] ss:$8 sps:$4 sm:$0xff]  }
  0x34   :  { %1694 = vmatpush2.bf16.msra.mxu1 %v2494_v39  ;;  %1652 = vmatprep.subr.bf16.mxu0 %v2495_v40  ;;  %v2570_v39 = vld [vmem:[#allocation2 + $0x310] ss:$8 sps:$4 sm:$0xff]   ;;  %v41_v40 = vld [vmem:[%s3098_s0 + $0x28] sm:$0xff] }
  0x35   :  { %1695 = vmatprep.subr.bf16.mxu1 %v2497_v41  ;;  %v57_v41 = vld [vmem:[%s3098_s0 + $0xa8] sm:$0xff] }
  0x37   :  { %1653 = vmatpush2.bf16.msra.mxu0 %v2499_v42  ;;  %v43_v42 = vld [vmem:[%s3098_s0 + $0x38] sm:$0xff] }
  0x38   :  { %1696 = vmatpush2.bf16.msra.mxu1 %v2500_v43  ;;  %1654 = vmatprep.subr.bf16.mxu0 %v2501_v44  ;;  %v2575_v43 = vld [vmem:[#allocation2 + $0x204] ss:$8 sps:$4 sm:$0xff]   ;;  %v75_v47 = vpack.c.bf16 %v59_v46, %v43_v42  ;;  %v2653_v46 = vld [vmem:[#allocation2 + $0x434] ss:$8 sps:$4 sm:$0xff]  }
  0x39   :  { %1697 = vmatprep.subr.bf16.mxu1 %v2503_v45  ;;  %v2578_v44 = vld [vmem:[#allocation2 + $0x304] ss:$8 sps:$4 sm:$0xff]   ;;  %v73_v45 = vpack.c.bf16 %v57_v41, %v41_v40  ;;  %v2642_v40 = vld [vmem:[#allocation2 + $0x550] ss:$8 sps:$4 sm:$0xff]  }
  0x3a   :  { %v2647_v42 = vld [vmem:[#allocation2 + $0x444] ss:$8 sps:$4 sm:$0xff]  }
  0x3b   :  { %1655 = vmatpush2.bf16.msra.mxu0 %v2505_v50  ;;  %v2581_v50 = vld [vmem:[#allocation2 + $0x2f4] ss:$8 sps:$4 sm:$0xff]  }
  0x3c   :  { %1698 = vmatpush2.bf16.msra.mxu1 %v2506_v51  ;;  %1656 = vmatprep.subr.bf16.mxu0 %v2507_v52  ;;  %v2584_v51 = vld [vmem:[#allocation2 + $0x3f4] ss:$8 sps:$4 sm:$0xff]   ;;  %v2579_v52 = vld [vmem:[#allocation2 + $0x2f0] ss:$8 sps:$4 sm:$0xff]  }
  0x3d   :  { %1699 = vmatprep.subr.bf16.mxu1 %v2509_v55  ;;  %v2590_v55 = vld [vmem:[#allocation2 + $0x3e4] ss:$8 sps:$4 sm:$0xff]  }
  0x3f   :  { %1657 = vmatpush2.bf16.msra.mxu0 %v2511_v56  ;;  %v2585_v56 = vld [vmem:[#allocation2 + $0x2e0] ss:$8 sps:$4 sm:$0xff]  }
  0x40   :  { %1700 = vmatpush2.bf16.msra.mxu1 %v2512_v57  ;;  %1658 = vmatprep.subr.bf16.mxu0 %v2513_v58  ;;  %v2588_v57 = vld [vmem:[#allocation2 + $0x3e0] ss:$8 sps:$4 sm:$0xff]   ;;  %v2593_v58 = vld [vmem:[#allocation2 + $0x2d4] ss:$8 sps:$4 sm:$0xff]  }
  0x41   :  { %1701 = vmatprep.subr.bf16.mxu1 %v2515_v59  ;;  %v2596_v59 = vld [vmem:[#allocation2 + $0x3d4] ss:$8 sps:$4 sm:$0xff]  }
  0x43   :  { %1659 = vmatpush2.bf16.msra.mxu0 %v2517_v60  ;;  %v2591_v60 = vld [vmem:[#allocation2 + $0x2d0] ss:$8 sps:$4 sm:$0xff]  }
  0x44   :  { %1702 = vmatpush2.bf16.msra.mxu1 %v2518_v61  ;;  %1660 = vmatprep.subr.bf16.mxu0 %v2519_v62  ;;  %v2594_v61 = vld [vmem:[#allocation2 + $0x3d0] ss:$8 sps:$4 sm:$0xff]   ;;  %v2599_v62 = vld [vmem:[#allocation2 + $0x2c4] ss:$8 sps:$4 sm:$0xff]  }
  0x45   :  { %1703 = vmatprep.subr.bf16.mxu1 %v2521_v63  ;;  %v2602_v63 = vld [vmem:[#allocation2 + $0x3c4] ss:$8 sps:$4 sm:$0xff]  }
  0x47   :  { %1661 = vmatpush2.bf16.msra.mxu0 %v2523_v0  ;;  %v2597_v0 = vld [vmem:[#allocation2 + $0x2c0] ss:$8 sps:$4 sm:$0xff]  }
  0x48   :  { %1704 = vmatpush2.bf16.msra.mxu1 %v2524_v1  ;;  %1662 = vmatprep.subr.bf16.mxu0 %v2525_v2  ;;  %v2600_v1 = vld [vmem:[#allocation2 + $0x3c0] ss:$8 sps:$4 sm:$0xff]   ;;  %v2605_v2 = vld [vmem:[#allocation2 + $0x2b4] ss:$8 sps:$4 sm:$0xff]  }
  0x49   :  { %1705 = vmatprep.subr.bf16.mxu1 %v2527_v3  ;;  %v2608_v3 = vld [vmem:[#allocation2 + $0x3b4] ss:$8 sps:$4 sm:$0xff]  }
  0x4b   :  { %1663 = vmatpush2.bf16.msra.mxu0 %v2529_v4  ;;  %v2603_v4 = vld [vmem:[#allocation2 + $0x2b0] ss:$8 sps:$4 sm:$0xff]  }
  0x4c   :  { %1706 = vmatpush2.bf16.msra.mxu1 %v2530_v5  ;;  %1718 = vmatprep.subr.bf16.mxu0 %v2533_v10  ;;  %v2606_v5 = vld [vmem:[#allocation2 + $0x3b0] ss:$8 sps:$4 sm:$0xff]   ;;  %v2617_v10 = vld [vmem:[#allocation2 + $0x294] ss:$8 sps:$4 sm:$0xff]  }
  0x4d   :  { %1761 = vmatprep.subr.bf16.mxu1 %v2536_v11  ;;  %v2620_v11 = vld [vmem:[#allocation2 + $0x394] ss:$8 sps:$4 sm:$0xff]  }
  0x4e   :  { %1665 = vmatmul.mubr.bf16.vlgmr.msra.gmra.mxu0 %v68_v12  ;;  %v2615_v12 = vld [vmem:[#allocation2 + $0x290] ss:$8 sps:$4 sm:$0xff]  }
  0x4f   :  { %1708 = vmatmul.mubr.bf16.vlgmr.msra.gmra.mxu1 %v70_v13  ;;  %1719 = vmatpush1.bf16.msra.mxu0 %v2531_v14  ;;  %v2618_v13 = vld [vmem:[#allocation2 + $0x390] ss:$8 sps:$4 sm:$0xff]   ;;  %v2623_v14 = vld [vmem:[#allocation2 + $0x284] ss:$8 sps:$4 sm:$0xff]  }
  0x50   :  { %1762 = vmatpush1.bf16.msra.mxu1 %v2534_v15  ;;  %1720 = vmatprep.subr.bf16.mxu0 %v2539_v16  ;;  %v2626_v15 = vld [vmem:[#allocation2 + $0x384] ss:$8 sps:$4 sm:$0xff]   ;;  %v2621_v16 = vld [vmem:[#allocation2 + $0x280] ss:$8 sps:$4 sm:$0xff]  }
  0x51   :  { %1763 = vmatprep.subr.bf16.mxu1 %v2542_v17  ;;  %1750 = vmatprep.mubr.bf16.mxu0 %v73_v45  ;;  %v2624_v17 = vld [vmem:[#allocation2 + $0x380] ss:$8 sps:$4 sm:$0xff]  }
  0x52   :  { %1793 = vmatprep.mubr.bf16.mxu1 %v75_v47  ;;  %v2648_v45 = vld [vmem:[#allocation2 + $0x540] ss:$8 sps:$4 sm:$0xff]   ;;  %v2656_v47 = vld [vmem:[#allocation2 + $0x534] ss:$8 sps:$4 sm:$0xff]  }
  0x53   :  { %1721 = vmatpush1.bf16.msra.mxu0 %v2537_v18  ;;  %v40_v18 = vld [vmem:[%s3098_s0 + $0x20] sm:$0xff] }
  0x54   :  { %1764 = vmatpush1.bf16.msra.mxu1 %v2540_v19  ;;  %1722 = vmatprep.subr.bf16.mxu0 %v2545_v20  ;;  %v56_v19 = vld [vmem:[%s3098_s0 + $0xa0] sm:$0xff]  ;;  %v42_v20 = vld [vmem:[%s3098_s0 + $0x30] sm:$0xff] }
  0x55   :  { %1765 = vmatprep.subr.bf16.mxu1 %v2548_v21  ;;  %v58_v21 = vld [vmem:[%s3098_s0 + $0xb0] sm:$0xff] }
  0x57   :  { %1723 = vmatpush1.bf16.msra.mxu0 %v2543_v22  ;;  %v2629_v22 = vld [vmem:[#allocation2 + $0x474] ss:$8 sps:$4 sm:$0xff]  }
  0x58   :  { %1766 = vmatpush1.bf16.msra.mxu1 %v2546_v23  ;;  %1724 = vmatprep.subr.bf16.mxu0 %v2551_v24  ;;  %v2632_v23 = vld [vmem:[#allocation2 + $0x574] ss:$8 sps:$4 sm:$0xff]   ;;  %v72_v24 = vpack.c.bf16 %v56_v19, %v40_v18  ;;  %v2707_v18 = vld [vmem:[#allocation2 + $0x4a4] ss:$8 sps:$4 sm:$0xff]  }
  0x59   :  { %1767 = vmatprep.subr.bf16.mxu1 %v2554_v25  ;;  %v74_v25 = vpack.c.bf16 %v58_v21, %v42_v20  ;;  %v2710_v19 = vld [vmem:[#allocation2 + $0x5a4] ss:$8 sps:$4 sm:$0xff]   ;;  %v2705_v20 = vld [vmem:[#allocation2 + $0x4a0] ss:$8 sps:$4 sm:$0xff]  }
  0x5a   :  { %v2708_v21 = vld [vmem:[#allocation2 + $0x5a0] ss:$8 sps:$4 sm:$0xff]  }
  0x5b   :  { %1725 = vmatpush1.bf16.msra.mxu0 %v2549_v26  ;;  %v2627_v26 = vld [vmem:[#allocation2 + $0x470] ss:$8 sps:$4 sm:$0xff]  }
  0x5c   :  { %1768 = vmatpush1.bf16.msra.mxu1 %v2552_v27  ;;  %1726 = vmatprep.subr.bf16.mxu0 %v2557_v28  ;;  %v2630_v27 = vld [vmem:[#allocation2 + $0x570] ss:$8 sps:$4 sm:$0xff]   ;;  %v2635_v28 = vld [vmem:[#allocation2 + $0x464] ss:$8 sps:$4 sm:$0xff]  }
  0x5d   :  { %1769 = vmatprep.subr.bf16.mxu1 %v2560_v29  ;;  %v2638_v29 = vld [vmem:[#allocation2 + $0x564] ss:$8 sps:$4 sm:$0xff]  }
  0x5f   :  { %1727 = vmatpush1.bf16.msra.mxu0 %v2555_v30  ;;  %v2633_v30 = vld [vmem:[#allocation2 + $0x460] ss:$8 sps:$4 sm:$0xff]  }
  0x60   :  { %1770 = vmatpush1.bf16.msra.mxu1 %v2558_v31  ;;  %1728 = vmatprep.subr.bf16.mxu0 %v2563_v32  ;;  %v2636_v31 = vld [vmem:[#allocation2 + $0x560] ss:$8 sps:$4 sm:$0xff]   ;;  %v2641_v32 = vld [vmem:[#allocation2 + $0x454] ss:$8 sps:$4 sm:$0xff]  }
  0x61   :  { %1771 = vmatprep.subr.bf16.mxu1 %v2566_v33  ;;  %v2644_v33 = vld [vmem:[#allocation2 + $0x554] ss:$8 sps:$4 sm:$0xff]  }
  0x63   :  { %1729 = vmatpush1.bf16.msra.mxu0 %v2561_v34  ;;  %v45_v34 = vld [vmem:[%s3098_s0 + $0x48] sm:$0xff] }
  0x64   :  { %1772 = vmatpush1.bf16.msra.mxu1 %v2564_v35  ;;  %1730 = vmatprep.subr.bf16.mxu0 %v2569_v36  ;;  %v61_v35 = vld [vmem:[%s3098_s0 + $0xc8] sm:$0xff] }
  0x65   :  { %1773 = vmatprep.subr.bf16.mxu1 %v2572_v37  ;;  %v77_v36 = vpack.c.bf16 %v61_v35, %v45_v34  ;;  %v47_v37 = vld [vmem:[%s3098_s0 + $0x58] sm:$0xff] }
  0x66   :  { %v2725_v34 = vld [vmem:[#allocation2 + $0x674] ss:$8 sps:$4 sm:$0xff]  }
  0x67   :  { %1731 = vmatpush1.bf16.msra.mxu0 %v2567_v38  ;;  %v63_v38 = vld [vmem:[%s3098_s0 + $0xd8] sm:$0xff] }
  0x68   :  { %1774 = vmatpush1.bf16.msra.mxu1 %v2570_v39  ;;  %1732 = vmatprep.subr.bf16.mxu0 %v2575_v43  ;;  %v2639_v39 = vld [vmem:[#allocation2 + $0x450] ss:$8 sps:$4 sm:$0xff]   ;;  %v79_v41 = vpack.c.bf16 %v63_v38, %v47_v37  ;;  %v2650_v43 = vld [vmem:[#allocation2 + $0x544] ss:$8 sps:$4 sm:$0xff]   ;;  %v2728_v35 = vld [vmem:[#allocation2 + $0x774] ss:$8 sps:$4 sm:$0xff]  }
  0x69   :  { %1775 = vmatprep.subr.bf16.mxu1 %v2578_v44  ;;  %v2645_v44 = vld [vmem:[#allocation2 + $0x440] ss:$8 sps:$4 sm:$0xff]  }
  0x6b   :  { %1733 = vmatpush1.bf16.msra.mxu0 %v2573_v48  ;;  %v2651_v48 = vld [vmem:[#allocation2 + $0x430] ss:$8 sps:$4 sm:$0xff]  }
  0x6c   :  { %1776 = vmatpush1.bf16.msra.mxu1 %v2576_v49  ;;  %1734 = vmatprep.subr.bf16.mxu0 %v2581_v50  ;;  %v2654_v49 = vld [vmem:[#allocation2 + $0x530] ss:$8 sps:$4 sm:$0xff]   ;;  %v2659_v50 = vld [vmem:[#allocation2 + $0x424] ss:$8 sps:$4 sm:$0xff]  }
  0x6d   :  { %1777 = vmatprep.subr.bf16.mxu1 %v2584_v51  ;;  %v2662_v51 = vld [vmem:[#allocation2 + $0x524] ss:$8 sps:$4 sm:$0xff]  }
  0x6f   :  { %1735 = vmatpush2.bf16.msra.mxu0 %v2579_v52  ;;  %v2657_v52 = vld [vmem:[#allocation2 + $0x420] ss:$8 sps:$4 sm:$0xff]  }
  0x70   :  { %1778 = vmatpush2.bf16.msra.mxu1 %v2582_v53  ;;  %1736 = vmatprep.subr.bf16.mxu0 %v2587_v54  ;;  %v2660_v53 = vld [vmem:[#allocation2 + $0x520] ss:$8 sps:$4 sm:$0xff]   ;;  %v2665_v54 = vld [vmem:[#allocation2 + $0x414] ss:$8 sps:$4 sm:$0xff]  }
  0x71   :  { %1779 = vmatprep.subr.bf16.mxu1 %v2590_v55  ;;  %v2668_v55 = vld [vmem:[#allocation2 + $0x514] ss:$8 sps:$4 sm:$0xff]  }
  0x73   :  { %1737 = vmatpush2.bf16.msra.mxu0 %v2585_v56  ;;  %v2663_v56 = vld [vmem:[#allocation2 + $0x410] ss:$8 sps:$4 sm:$0xff]  }
  0x74   :  { %1780 = vmatpush2.bf16.msra.mxu1 %v2588_v57  ;;  %1738 = vmatprep.subr.bf16.mxu0 %v2593_v58  ;;  %v2666_v57 = vld [vmem:[#allocation2 + $0x510] ss:$8 sps:$4 sm:$0xff]   ;;  %v2671_v58 = vld [vmem:[#allocation2 + $0x404] ss:$8 sps:$4 sm:$0xff]  }
  0x75   :  { %1781 = vmatprep.subr.bf16.mxu1 %v2596_v59  ;;  %v2674_v59 = vld [vmem:[#allocation2 + $0x504] ss:$8 sps:$4 sm:$0xff]  }
  0x77   :  { %1739 = vmatpush2.bf16.msra.mxu0 %v2591_v60  ;;  %v2669_v60 = vld [vmem:[#allocation2 + $0x400] ss:$8 sps:$4 sm:$0xff]  }
  0x78   :  { %1782 = vmatpush2.bf16.msra.mxu1 %v2594_v61  ;;  %1740 = vmatprep.subr.bf16.mxu0 %v2599_v62  ;;  %v2672_v61 = vld [vmem:[#allocation2 + $0x500] ss:$8 sps:$4 sm:$0xff]   ;;  %v2677_v62 = vld [vmem:[#allocation2 + $0x4f4] ss:$8 sps:$4 sm:$0xff]  }
  0x79   :  { %1783 = vmatprep.subr.bf16.mxu1 %v2602_v63  ;;  %v2680_v63 = vld [vmem:[#allocation2 + $0x5f4] ss:$8 sps:$4 sm:$0xff]  }
  0x7b   :  { %1741 = vmatpush2.bf16.msra.mxu0 %v2597_v0  ;;  %v2675_v0 = vld [vmem:[#allocation2 + $0x4f0] ss:$8 sps:$4 sm:$0xff]  }
  0x7c   :  { %1784 = vmatpush2.bf16.msra.mxu1 %v2600_v1  ;;  %1742 = vmatprep.subr.bf16.mxu0 %v2605_v2  ;;  %v2678_v1 = vld [vmem:[#allocation2 + $0x5f0] ss:$8 sps:$4 sm:$0xff]   ;;  %v2683_v2 = vld [vmem:[#allocation2 + $0x4e4] ss:$8 sps:$4 sm:$0xff]  }
  0x7d   :  { %1785 = vmatprep.subr.bf16.mxu1 %v2608_v3  ;;  %v2686_v3 = vld [vmem:[#allocation2 + $0x5e4] ss:$8 sps:$4 sm:$0xff]  }
  0x7f   :  { %1743 = vmatpush2.bf16.msra.mxu0 %v2603_v4  ;;  %v2681_v4 = vld [vmem:[#allocation2 + $0x4e0] ss:$8 sps:$4 sm:$0xff]  }
  0x80   :  { %1786 = vmatpush2.bf16.msra.mxu1 %v2606_v5  ;;  %1744 = vmatprep.subr.bf16.mxu0 %v2611_v6  ;;  %v2684_v5 = vld [vmem:[#allocation2 + $0x5e0] ss:$8 sps:$4 sm:$0xff]   ;;  %v2689_v6 = vld [vmem:[#allocation2 + $0x4d4] ss:$8 sps:$4 sm:$0xff]  }
  0x81   :  { %1787 = vmatprep.subr.bf16.mxu1 %v2614_v7  ;;  %v2692_v7 = vld [vmem:[#allocation2 + $0x5d4] ss:$8 sps:$4 sm:$0xff]  }
  0x83   :  { %1745 = vmatpush2.bf16.msra.mxu0 %v2609_v8  ;;  %v2687_v8 = vld [vmem:[#allocation2 + $0x4d0] ss:$8 sps:$4 sm:$0xff]  }
  0x84   :  { %1788 = vmatpush2.bf16.msra.mxu1 %v2612_v9  ;;  %1746 = vmatprep.subr.bf16.mxu0 %v2617_v10  ;;  %v2690_v9 = vld [vmem:[#allocation2 + $0x5d0] ss:$8 sps:$4 sm:$0xff]   ;;  %v2695_v10 = vld [vmem:[#allocation2 + $0x4c4] ss:$8 sps:$4 sm:$0xff]  }
  0x85   :  { %1789 = vmatprep.subr.bf16.mxu1 %v2620_v11  ;;  %v2698_v11 = vld [vmem:[#allocation2 + $0x5c4] ss:$8 sps:$4 sm:$0xff]  }
  0x87   :  { %1747 = vmatpush2.bf16.msra.mxu0 %v2615_v12  ;;  %v2693_v12 = vld [vmem:[#allocation2 + $0x4c0] ss:$8 sps:$4 sm:$0xff]  }
  0x88   :  { %1790 = vmatpush2.bf16.msra.mxu1 %v2618_v13  ;;  %1748 = vmatprep.subr.bf16.mxu0 %v2623_v14  ;;  %v2696_v13 = vld [vmem:[#allocation2 + $0x5c0] ss:$8 sps:$4 sm:$0xff]   ;;  %v2701_v14 = vld [vmem:[#allocation2 + $0x4b4] ss:$8 sps:$4 sm:$0xff]  }
  0x89   :  { %1791 = vmatprep.subr.bf16.mxu1 %v2626_v15  ;;  %v2704_v15 = vld [vmem:[#allocation2 + $0x5b4] ss:$8 sps:$4 sm:$0xff]  }
  0x8b   :  { %1749 = vmatpush2.bf16.msra.mxu0 %v2621_v16  ;;  %v2699_v16 = vld [vmem:[#allocation2 + $0x4b0] ss:$8 sps:$4 sm:$0xff]  }
  0x8c   :  { %1792 = vmatpush2.bf16.msra.mxu1 %v2624_v17  ;;  %1804 = vmatprep.subr.bf16.mxu0 %v2629_v22  ;;  %v2702_v17 = vld [vmem:[#allocation2 + $0x5b0] ss:$8 sps:$4 sm:$0xff]   ;;  %v2713_v22 = vld [vmem:[#allocation2 + $0x494] ss:$8 sps:$4 sm:$0xff]  }
  0x8d   :  { %1847 = vmatprep.subr.bf16.mxu1 %v2632_v23  ;;  %v2716_v23 = vld [vmem:[#allocation2 + $0x594] ss:$8 sps:$4 sm:$0xff]  }
  0x8e   :  { %1751 = vmatmul.mubr.bf16.vlgmr.msra.gmra.mxu0 %v72_v24  ;;  %v2711_v24 = vld [vmem:[#allocation2 + $0x490] ss:$8 sps:$4 sm:$0xff]  }
  0x8f   :  { %1794 = vmatmul.mubr.bf16.vlgmr.msra.gmra.mxu1 %v74_v25  ;;  %1805 = vmatpush1.bf16.msra.mxu0 %v2627_v26  ;;  %v2714_v25 = vld [vmem:[#allocation2 + $0x590] ss:$8 sps:$4 sm:$0xff]   ;;  %v2719_v26 = vld [vmem:[#allocation2 + $0x484] ss:$8 sps:$4 sm:$0xff]  }
  0x90   :  { %1848 = vmatpush1.bf16.msra.mxu1 %v2630_v27  ;;  %1806 = vmatprep.subr.bf16.mxu0 %v2635_v28  ;;  %v2722_v27 = vld [vmem:[#allocation2 + $0x584] ss:$8 sps:$4 sm:$0xff]   ;;  %v2717_v28 = vld [vmem:[#allocation2 + $0x480] ss:$8 sps:$4 sm:$0xff]  }
  0x91   :  { %1849 = vmatprep.subr.bf16.mxu1 %v2638_v29  ;;  %1836 = vmatprep.mubr.bf16.mxu0 %v77_v36  ;;  %v2720_v29 = vld [vmem:[#allocation2 + $0x580] ss:$8 sps:$4 sm:$0xff]  }
  0x92   :  { %1879 = vmatprep.mubr.bf16.mxu1 %v79_v41  ;;  %v49_v36 = vld [vmem:[%s3098_s0 + $0x68] sm:$0xff]  ;;  %v67_v41 = vld [vmem:[%s3098_s0 + $0xf8] sm:$0xff] }
  0x93   :  { %1807 = vmatpush1.bf16.msra.mxu0 %v2633_v30  ;;  %v44_v30 = vld [vmem:[%s3098_s0 + $0x40] sm:$0xff] }
  0x94   :  { %1850 = vmatpush1.bf16.msra.mxu1 %v2636_v31  ;;  %1808 = vmatprep.subr.bf16.mxu0 %v2641_v32  ;;  %v60_v31 = vld [vmem:[%s3098_s0 + $0xc0] sm:$0xff]  ;;  %v46_v32 = vld [vmem:[%s3098_s0 + $0x50] sm:$0xff] }
  0x95   :  { %1851 = vmatprep.subr.bf16.mxu1 %v2644_v33  ;;  %v62_v33 = vld [vmem:[%s3098_s0 + $0xd0] sm:$0xff]  ;;  %v76_v37 = vpack.c.bf16 %v60_v31, %v44_v30  ;;  %v2803_v30 = vld [vmem:[#allocation2 + $0x6a4] ss:$8 sps:$4 sm:$0xff]  }
  0x96   :  { %v78_v38 = vpack.c.bf16 %v62_v33, %v46_v32  ;;  %v2806_v31 = vld [vmem:[#allocation2 + $0x7a4] ss:$8 sps:$4 sm:$0xff]   ;;  %v2801_v32 = vld [vmem:[#allocation2 + $0x6a0] ss:$8 sps:$4 sm:$0xff]  }
  0x97   :  { %1809 = vmatpush1.bf16.msra.mxu0 %v2639_v39  ;;  %v65_v39 = vld [vmem:[%s3098_s0 + $0xe8] sm:$0xff] }
  0x98   :  { %1852 = vmatpush1.bf16.msra.mxu1 %v2642_v40  ;;  %1810 = vmatprep.subr.bf16.mxu0 %v2647_v42  ;;  %v51_v40 = vld [vmem:[%s3098_s0 + $0x78] sm:$0xff]  ;;  %v2804_v33 = vld [vmem:[#allocation2 + $0x7a0] ss:$8 sps:$4 sm:$0xff]  }
  0x99   :  { %1853 = vmatprep.subr.bf16.mxu1 %v2650_v43  ;;  %v2723_v42 = vld [vmem:[#allocation2 + $0x670] ss:$8 sps:$4 sm:$0xff]  }
  0x9a   :  { %v2726_v43 = vld [vmem:[#allocation2 + $0x770] ss:$8 sps:$4 sm:$0xff]  }
  0x9b   :  { %1811 = vmatpush1.bf16.msra.mxu0 %v2645_v44  ;;  %v2731_v44 = vld [vmem:[#allocation2 + $0x664] ss:$8 sps:$4 sm:$0xff]  }
  0x9c   :  { %1854 = vmatpush1.bf16.msra.mxu1 %v2648_v45  ;;  %1812 = vmatprep.subr.bf16.mxu0 %v2653_v46  ;;  %v2734_v45 = vld [vmem:[#allocation2 + $0x764] ss:$8 sps:$4 sm:$0xff]   ;;  %v81_v46 = vpack.c.bf16 %v65_v39, %v49_v36  ;;  %v2807_v36 = vld [vmem:[#allocation2 + $0x690] ss:$8 sps:$4 sm:$0xff]  }
  0x9d   :  { %1855 = vmatprep.subr.bf16.mxu1 %v2656_v47  ;;  %v83_v47 = vpack.c.bf16 %v67_v41, %v51_v40  ;;  %v2818_v39 = vld [vmem:[#allocation2 + $0x784] ss:$8 sps:$4 sm:$0xff]   ;;  %v2813_v40 = vld [vmem:[#allocation2 + $0x680] ss:$8 sps:$4 sm:$0xff]  }
  0x9e   :  { %v2816_v41 = vld [vmem:[#allocation2 + $0x780] ss:$8 sps:$4 sm:$0xff]  }
  0x9f   :  { %1813 = vmatpush1.bf16.msra.mxu0 %v2651_v48  ;;  %v2729_v48 = vld [vmem:[#allocation2 + $0x660] ss:$8 sps:$4 sm:$0xff]  }
  0xa0   :  { %1856 = vmatpush1.bf16.msra.mxu1 %v2654_v49  ;;  %1814 = vmatprep.subr.bf16.mxu0 %v2659_v50  ;;  %v2732_v49 = vld [vmem:[#allocation2 + $0x760] ss:$8 sps:$4 sm:$0xff]   ;;  %v2737_v50 = vld [vmem:[#allocation2 + $0x654] ss:$8 sps:$4 sm:$0xff]  }
  0xa1   :  { %1857 = vmatprep.subr.bf16.mxu1 %v2662_v51  ;;  %v2740_v51 = vld [vmem:[#allocation2 + $0x754] ss:$8 sps:$4 sm:$0xff]  }
  0xa3   :  { %1815 = vmatpush1.bf16.msra.mxu0 %v2657_v52  ;;  %v2735_v52 = vld [vmem:[#allocation2 + $0x650] ss:$8 sps:$4 sm:$0xff]  }
  0xa4   :  { %1858 = vmatpush1.bf16.msra.mxu1 %v2660_v53  ;;  %1816 = vmatprep.subr.bf16.mxu0 %v2665_v54  ;;  %v2738_v53 = vld [vmem:[#allocation2 + $0x750] ss:$8 sps:$4 sm:$0xff]   ;;  %v2743_v54 = vld [vmem:[#allocation2 + $0x644] ss:$8 sps:$4 sm:$0xff]  }
  0xa5   :  { %1859 = vmatprep.subr.bf16.mxu1 %v2668_v55  ;;  %v2746_v55 = vld [vmem:[#allocation2 + $0x744] ss:$8 sps:$4 sm:$0xff]  }
  0xa7   :  { %1817 = vmatpush1.bf16.msra.mxu0 %v2663_v56  ;;  %v2741_v56 = vld [vmem:[#allocation2 + $0x640] ss:$8 sps:$4 sm:$0xff]  }
  0xa8   :  { %1860 = vmatpush1.bf16.msra.mxu1 %v2666_v57  ;;  %1818 = vmatprep.subr.bf16.mxu0 %v2671_v58  ;;  %v2744_v57 = vld [vmem:[#allocation2 + $0x740] ss:$8 sps:$4 sm:$0xff]   ;;  %v2749_v58 = vld [vmem:[#allocation2 + $0x634] ss:$8 sps:$4 sm:$0xff]  }
  0xa9   :  { %1861 = vmatprep.subr.bf16.mxu1 %v2674_v59  ;;  %v2752_v59 = vld [vmem:[#allocation2 + $0x734] ss:$8 sps:$4 sm:$0xff]  }
  0xab   :  { %1819 = vmatpush1.bf16.msra.mxu0 %v2669_v60  ;;  %v2747_v60 = vld [vmem:[#allocation2 + $0x630] ss:$8 sps:$4 sm:$0xff]  }
  0xac   :  { %1862 = vmatpush1.bf16.msra.mxu1 %v2672_v61  ;;  %1820 = vmatprep.subr.bf16.mxu0 %v2677_v62  ;;  %v2750_v61 = vld [vmem:[#allocation2 + $0x730] ss:$8 sps:$4 sm:$0xff]   ;;  %v2755_v62 = vld [vmem:[#allocation2 + $0x624] ss:$8 sps:$4 sm:$0xff]  }
  0xad   :  { %1863 = vmatprep.subr.bf16.mxu1 %v2680_v63  ;;  %v2758_v63 = vld [vmem:[#allocation2 + $0x724] ss:$8 sps:$4 sm:$0xff]  }
  0xaf   :  { %1821 = vmatpush2.bf16.msra.mxu0 %v2675_v0  ;;  %v2753_v0 = vld [vmem:[#allocation2 + $0x620] ss:$8 sps:$4 sm:$0xff]  }
  0xb0   :  { %1864 = vmatpush2.bf16.msra.mxu1 %v2678_v1  ;;  %1822 = vmatprep.subr.bf16.mxu0 %v2683_v2  ;;  %v2756_v1 = vld [vmem:[#allocation2 + $0x720] ss:$8 sps:$4 sm:$0xff]   ;;  %v2761_v2 = vld [vmem:[#allocation2 + $0x614] ss:$8 sps:$4 sm:$0xff]  }
  0xb1   :  { %1865 = vmatprep.subr.bf16.mxu1 %v2686_v3  ;;  %v2764_v3 = vld [vmem:[#allocation2 + $0x714] ss:$8 sps:$4 sm:$0xff]  }
  0xb3   :  { %1823 = vmatpush2.bf16.msra.mxu0 %v2681_v4  ;;  %v2759_v4 = vld [vmem:[#allocation2 + $0x610] ss:$8 sps:$4 sm:$0xff]  }
  0xb4   :  { %1866 = vmatpush2.bf16.msra.mxu1 %v2684_v5  ;;  %1824 = vmatprep.subr.bf16.mxu0 %v2689_v6  ;;  %v2762_v5 = vld [vmem:[#allocation2 + $0x710] ss:$8 sps:$4 sm:$0xff]   ;;  %v2767_v6 = vld [vmem:[#allocation2 + $0x604] ss:$8 sps:$4 sm:$0xff]  }
  0xb5   :  { %1867 = vmatprep.subr.bf16.mxu1 %v2692_v7  ;;  %v2770_v7 = vld [vmem:[#allocation2 + $0x704] ss:$8 sps:$4 sm:$0xff]  }
  0xb7   :  { %1825 = vmatpush2.bf16.msra.mxu0 %v2687_v8  ;;  %v2765_v8 = vld [vmem:[#allocation2 + $0x600] ss:$8 sps:$4 sm:$0xff]  }
  0xb8   :  { %1868 = vmatpush2.bf16.msra.mxu1 %v2690_v9  ;;  %1826 = vmatprep.subr.bf16.mxu0 %v2695_v10  ;;  %v2768_v9 = vld [vmem:[#allocation2 + $0x700] ss:$8 sps:$4 sm:$0xff]   ;;  %v2773_v10 = vld [vmem:[#allocation2 + $0x6f4] ss:$8 sps:$4 sm:$0xff]  }
  0xb9   :  { %1869 = vmatprep.subr.bf16.mxu1 %v2698_v11  ;;  %v2776_v11 = vld [vmem:[#allocation2 + $0x7f4] ss:$8 sps:$4 sm:$0xff]  }
  0xbb   :  { %1827 = vmatpush2.bf16.msra.mxu0 %v2693_v12  ;;  %v2771_v12 = vld [vmem:[#allocation2 + $0x6f0] ss:$8 sps:$4 sm:$0xff]  }
  0xbc   :  { %1870 = vmatpush2.bf16.msra.mxu1 %v2696_v13  ;;  %1828 = vmatprep.subr.bf16.mxu0 %v2701_v14  ;;  %v2774_v13 = vld [vmem:[#allocation2 + $0x7f0] ss:$8 sps:$4 sm:$0xff]   ;;  %v2779_v14 = vld [vmem:[#allocation2 + $0x6e4] ss:$8 sps:$4 sm:$0xff]  }
  0xbd   :  { %1871 = vmatprep.subr.bf16.mxu1 %v2704_v15  ;;  %v2782_v15 = vld [vmem:[#allocation2 + $0x7e4] ss:$8 sps:$4 sm:$0xff]  }
  0xbf   :  { %1829 = vmatpush2.bf16.msra.mxu0 %v2699_v16  ;;  %v2777_v16 = vld [vmem:[#allocation2 + $0x6e0] ss:$8 sps:$4 sm:$0xff]  }
  0xc0   :  { %1872 = vmatpush2.bf16.msra.mxu1 %v2702_v17  ;;  %1830 = vmatprep.subr.bf16.mxu0 %v2707_v18  ;;  %v2780_v17 = vld [vmem:[#allocation2 + $0x7e0] ss:$8 sps:$4 sm:$0xff]   ;;  %v2785_v18 = vld [vmem:[#allocation2 + $0x6d4] ss:$8 sps:$4 sm:$0xff]  }
  0xc1   :  { %1873 = vmatprep.subr.bf16.mxu1 %v2710_v19  ;;  %v2788_v19 = vld [vmem:[#allocation2 + $0x7d4] ss:$8 sps:$4 sm:$0xff]  }
  0xc3   :  { %1831 = vmatpush2.bf16.msra.mxu0 %v2705_v20  ;;  %v2783_v20 = vld [vmem:[#allocation2 + $0x6d0] ss:$8 sps:$4 sm:$0xff]  }
  0xc4   :  { %1874 = vmatpush2.bf16.msra.mxu1 %v2708_v21  ;;  %1832 = vmatprep.subr.bf16.mxu0 %v2713_v22  ;;  %v2786_v21 = vld [vmem:[#allocation2 + $0x7d0] ss:$8 sps:$4 sm:$0xff]   ;;  %v2791_v22 = vld [vmem:[#allocation2 + $0x6c4] ss:$8 sps:$4 sm:$0xff]  }
  0xc5   :  { %1875 = vmatprep.subr.bf16.mxu1 %v2716_v23  ;;  %v2794_v23 = vld [vmem:[#allocation2 + $0x7c4] ss:$8 sps:$4 sm:$0xff]  }
  0xc7   :  { %1833 = vmatpush2.bf16.msra.mxu0 %v2711_v24  ;;  %v2789_v24 = vld [vmem:[#allocation2 + $0x6c0] ss:$8 sps:$4 sm:$0xff]  }
  0xc8   :  { %1876 = vmatpush2.bf16.msra.mxu1 %v2714_v25  ;;  %1834 = vmatprep.subr.bf16.mxu0 %v2719_v26  ;;  %v2792_v25 = vld [vmem:[#allocation2 + $0x7c0] ss:$8 sps:$4 sm:$0xff]   ;;  %v2797_v26 = vld [vmem:[#allocation2 + $0x6b4] ss:$8 sps:$4 sm:$0xff]  }
  0xc9   :  { %1877 = vmatprep.subr.bf16.mxu1 %v2722_v27  ;;  %v2800_v27 = vld [vmem:[#allocation2 + $0x7b4] ss:$8 sps:$4 sm:$0xff]  }
  0xcb   :  { %1835 = vmatpush2.bf16.msra.mxu0 %v2717_v28  ;;  %v2795_v28 = vld [vmem:[#allocation2 + $0x6b0] ss:$8 sps:$4 sm:$0xff]  }
  0xcc   :  { %1878 = vmatpush2.bf16.msra.mxu1 %v2720_v29  ;;  %1890 = vmatprep.subr.bf16.mxu0 %v2725_v34  ;;  %v2798_v29 = vld [vmem:[#allocation2 + $0x7b0] ss:$8 sps:$4 sm:$0xff]   ;;  %v2809_v34 = vld [vmem:[#allocation2 + $0x694] ss:$8 sps:$4 sm:$0xff]  }
  0xcd   :  { %1933 = vmatprep.subr.bf16.mxu1 %v2728_v35  ;;  %v2812_v35 = vld [vmem:[#allocation2 + $0x794] ss:$8 sps:$4 sm:$0xff]  }
  0xce   :  { %1837 = vmatmul.mubr.bf16.vlgmr.msra.gmra.mxu0 %v76_v37  ;;  %v2810_v37 = vld [vmem:[#allocation2 + $0x790] ss:$8 sps:$4 sm:$0xff]  }
  0xcf   :  { %1880 = vmatmul.mubr.bf16.vlgmr.msra.gmra.mxu1 %v78_v38  ;;  %1891 = vmatpush1.bf16.msra.mxu0 %v2723_v42  ;;  %v2815_v38 = vld [vmem:[#allocation2 + $0x684] ss:$8 sps:$4 sm:$0xff]  }
  0xd0   :  { %1934 = vmatpush1.bf16.msra.mxu1 %v2726_v43  ;;  %1892 = vmatprep.subr.bf16.mxu0 %v2731_v44  ;;  %v48_v42 = vld [vmem:[%s3098_s0 + $0x60] sm:$0xff]  ;;  %v50_v44 = vld [vmem:[%s3098_s0 + $0x70] sm:$0xff] }
  0xd1   :  { %1935 = vmatprep.subr.bf16.mxu1 %v2734_v45  ;;  %1922 = vmatprep.mubr.bf16.mxu0 %v81_v46  ;;  %v64_v43 = vld [vmem:[%s3098_s0 + $0xe0] sm:$0xff]  ;;  %v66_v45 = vld [vmem:[%s3098_s0 + $0xf0] sm:$0xff] }
  0xd2   :  { %1965 = vmatprep.mubr.bf16.mxu1 %v83_v47  ;;  %v80_v46 = vpack.c.bf16 %v64_v43, %v48_v42  ;;  %v82_v47 = vpack.c.bf16 %v66_v45, %v50_v44 }
  0xd3   :  { %1893 = vmatpush1.bf16.msra.mxu0 %v2729_v48  ;;  %v2011_v48 = vld [vmem:[%s3101_s3 + $0xf8] sm:$0xff] }
  0xd4   :  { %1936 = vmatpush1.bf16.msra.mxu1 %v2732_v49  ;;  %1894 = vmatprep.subr.bf16.mxu0 %v2737_v50  ;;  %v1995_v49 = vld [vmem:[%s3101_s3 + $0x78] sm:$0xff]  ;;  %v2010_v50 = vld [vmem:[%s3101_s3 + $0xf0] sm:$0xff] }
  0xd5   :  { %1937 = vmatprep.subr.bf16.mxu1 %v2740_v51  ;;  %v1994_v51 = vld [vmem:[%s3101_s3 + $0x70] sm:$0xff] }
  0xd7   :  { %1895 = vmatpush1.bf16.msra.mxu0 %v2735_v52  ;;  %v2009_v52 = vld [vmem:[%s3101_s3 + $0xe8] sm:$0xff] }
  0xd8   :  { %1938 = vmatpush1.bf16.msra.mxu1 %v2738_v53  ;;  %1896 = vmatprep.subr.bf16.mxu0 %v2743_v54  ;;  %v1993_v53 = vld [vmem:[%s3101_s3 + $0x68] sm:$0xff]  ;;  %v2008_v54 = vld [vmem:[%s3101_s3 + $0xe0] sm:$0xff] }
  0xd9   :  { %1939 = vmatprep.subr.bf16.mxu1 %v2746_v55  ;;  %v1992_v55 = vld [vmem:[%s3101_s3 + $0x60] sm:$0xff] }
  0xdb   :  { %1897 = vmatpush1.bf16.msra.mxu0 %v2741_v56  ;;  %v2007_v56 = vld [vmem:[%s3101_s3 + $0xd8] sm:$0xff] }
  0xdc   :  { %1940 = vmatpush1.bf16.msra.mxu1 %v2744_v57  ;;  %1898 = vmatprep.subr.bf16.mxu0 %v2749_v58  ;;  %v1991_v57 = vld [vmem:[%s3101_s3 + $0x58] sm:$0xff]  ;;  %v2006_v58 = vld [vmem:[%s3101_s3 + $0xd0] sm:$0xff] }
  0xdd   :  { %1941 = vmatprep.subr.bf16.mxu1 %v2752_v59  ;;  %v1990_v59 = vld [vmem:[%s3101_s3 + $0x50] sm:$0xff] }
  0xdf   :  { %1899 = vmatpush1.bf16.msra.mxu0 %v2747_v60  ;;  %v2005_v60 = vld [vmem:[%s3101_s3 + $0xc8] sm:$0xff] }
  0xe0   :  { %1942 = vmatpush1.bf16.msra.mxu1 %v2750_v61  ;;  %1900 = vmatprep.subr.bf16.mxu0 %v2755_v62  ;;  %v1989_v61 = vld [vmem:[%s3101_s3 + $0x48] sm:$0xff]  ;;  %v2004_v62 = vld [vmem:[%s3101_s3 + $0xc0] sm:$0xff] }
  0xe1   :  { %1943 = vmatprep.subr.bf16.mxu1 %v2758_v63  ;;  %v1988_v63 = vld [vmem:[%s3101_s3 + $0x40] sm:$0xff] }
  0xe3   :  { %1901 = vmatpush1.bf16.msra.mxu0 %v2753_v0  ;;  %v2003_v0 = vld [vmem:[%s3101_s3 + $0xb8] sm:$0xff] }
  0xe4   :  { %1944 = vmatpush1.bf16.msra.mxu1 %v2756_v1  ;;  %1902 = vmatprep.subr.bf16.mxu0 %v2761_v2  ;;  %v1987_v1 = vld [vmem:[%s3101_s3 + $0x38] sm:$0xff]  ;;  %v2002_v2 = vld [vmem:[%s3101_s3 + $0xb0] sm:$0xff] }
  0xe5   :  { %1945 = vmatprep.subr.bf16.mxu1 %v2764_v3  ;;  %v1986_v3 = vld [vmem:[%s3101_s3 + $0x30] sm:$0xff] }
  0xe7   :  { %1903 = vmatpush1.bf16.msra.mxu0 %v2759_v4  ;;  %v2001_v4 = vld [vmem:[%s3101_s3 + $0xa8] sm:$0xff] }
  0xe8   :  { %1946 = vmatpush1.bf16.msra.mxu1 %v2762_v5  ;;  %1904 = vmatprep.subr.bf16.mxu0 %v2767_v6  ;;  %v1985_v5 = vld [vmem:[%s3101_s3 + $0x28] sm:$0xff]  ;;  %v2000_v6 = vld [vmem:[%s3101_s3 + $0xa0] sm:$0xff] }
  0xe9   :  { %1947 = vmatprep.subr.bf16.mxu1 %v2770_v7  ;;  %v1984_v7 = vld [vmem:[%s3101_s3 + $0x20] sm:$0xff] }
  0xeb   :  { %1905 = vmatpush1.bf16.msra.mxu0 %v2765_v8  ;;  %v1999_v8 = vld [vmem:[%s3101_s3 + $0x98] sm:$0xff] }
  0xec   :  { %1948 = vmatpush1.bf16.msra.mxu1 %v2768_v9  ;;  %1906 = vmatprep.subr.bf16.mxu0 %v2773_v10  ;;  %v1983_v9 = vld [vmem:[%s3101_s3 + $0x18] sm:$0xff]  ;;  %v1998_v10 = vld [vmem:[%s3101_s3 + $0x90] sm:$0xff] }
  0xed   :  { %1949 = vmatprep.subr.bf16.mxu1 %v2776_v11  ;;  %v1982_v11 = vld [vmem:[%s3101_s3 + $0x10] sm:$0xff] }
  0xef   :  { %1907 = vmatpush2.bf16.msra.mxu0 %v2771_v12  ;;  %v1997_v12 = vld [vmem:[%s3101_s3 + $0x88] sm:$0xff] }
  0xf0   :  { %1950 = vmatpush2.bf16.msra.mxu1 %v2774_v13  ;;  %1908 = vmatprep.subr.bf16.mxu0 %v2779_v14  ;;  %v1981_v13 = vld [vmem:[%s3101_s3 + $0x8] sm:$0xff]  ;;  %v1996_v14 = vld [vmem:[%s3101_s3 + $0x80] sm:$0xff] }
  0xf1   :  { %1951 = vmatprep.subr.bf16.mxu1 %v2782_v15  ;;  %v1980_v15 = vld [vmem:[%s3101_s3] sm:$0xff] }
  0xf3   :  { %1909 = vmatpush2.bf16.msra.mxu0 %v2777_v16 }
  0xf4   :  { %1952 = vmatpush2.bf16.msra.mxu1 %v2780_v17  ;;  %1910 = vmatprep.subr.bf16.mxu0 %v2785_v18 }
  0xf5   :  { %1953 = vmatprep.subr.bf16.mxu1 %v2788_v19 }
  0xf7   :  { %1911 = vmatpush2.bf16.msra.mxu0 %v2783_v20 }
  0xf8   :  { %1954 = vmatpush2.bf16.msra.mxu1 %v2786_v21  ;;  %1912 = vmatprep.subr.bf16.mxu0 %v2791_v22  ;;  %v342_v22 = vlaneseq }
  0xf9   :  { %1955 = vmatprep.subr.bf16.mxu1 %v2794_v23 }
  0xfb   :  { %1913 = vmatpush2.bf16.msra.mxu0 %v2789_v24 }
  0xfc   :  { %1956 = vmatpush2.bf16.msra.mxu1 %v2792_v25  ;;  %1914 = vmatprep.subr.bf16.mxu0 %v2797_v26  ;;  %v343_v25 = vshrl.u32 %v342_v22, 7 }
  0xfd   :  { %1957 = vmatprep.subr.bf16.mxu1 %v2800_v27 }
  0xff   :  { %1915 = vmatpush2.bf16.msra.mxu0 %v2795_v28  ;;  %v344_v28 = vsub.s32 0, %v343_v25 }
 0x100   :  { %1958 = vmatpush2.bf16.msra.mxu1 %v2798_v29  ;;  %1916 = vmatprep.subr.bf16.mxu0 %v2803_v30  ;;  %v340_v29 = vld [vmem:[%s3100_s2] sm:$0x3] }
 0x101   :  { %1959 = vmatprep.subr.bf16.mxu1 %v2806_v31 }
 0x103   :  { %1917 = vmatpush2.bf16.msra.mxu0 %v2801_v32  ;;  %v348_v32 = vsub.s32 1, %v343_v25 }
 0x104   :  { %1960 = vmatpush2.bf16.msra.mxu1 %v2804_v33  ;;  %1918 = vmatprep.subr.bf16.mxu0 %v2809_v34  ;;  %v345_v33 = vrot.slane %v340_v29, %v344_v28 }
 0x105   :  { %1961 = vmatprep.subr.bf16.mxu1 %v2812_v35 }
 0x107   :  { %1919 = vmatpush2.bf16.msra.mxu0 %v2807_v36  ;;  %v349_v36 = vrot.slane %v340_v29, %v348_v32 }
 0x108   :  { %1962 = vmatpush2.bf16.msra.mxu1 %v2810_v37  ;;  %1920 = vmatprep.subr.bf16.mxu0 %v2815_v38 }
 0x109   :  { %1963 = vmatprep.subr.bf16.mxu1 %v2818_v39 }
 0x10b   :  { %1921 = vmatpush2.bf16.msra.mxu0 %v2813_v40 }
 0x10c   :  { %1964 = vmatpush2.bf16.msra.mxu1 %v2816_v41  ;;  %2362 = vmatprep.subr.mxu0 %v2011_v48 }
 0x10d   :  { %2400 = vmatprep.subr.mxu1 %v2011_v48 }
 0x10e   :  { %1923 = vmatmul.mubr.bf16.vlgmr.msra.gmra.mxu0 %v80_v46  ;;  %v1666_v16 = vpop.f32.mrf.mxu0 }
 0x10f   :  { %1966 = vmatmul.mubr.bf16.vlgmr.msra.gmra.mxu1 %v82_v47  ;;  %2363 = vmatpush3.msra.mxu0 %v1995_v49  ;;  %v1709_v17 = vpop.f32.mrf.mxu1  ;;  %v1667_v37 = vadd.f32 %v1666_v16, %v345_v33 }
 0x110   :  { %2416 = vmatpush3.msra.mxu1 %v1995_v49  ;;  %2364 = vmatprep.subr.mxu0 %v2010_v50  ;;  %v1668_v18 = vpop.f32.mrf.mxu0 }
 0x111   :  { %2401 = vmatprep.subr.mxu1 %v2010_v50  ;;  %2365 = vmatpush3.msra.mxu0 %v1994_v51  ;;  %v1711_v19 = vpop.f32.mrf.mxu1  ;;  %v1669_v40 = vadd.f32 %v1668_v18, %v349_v36  ;;  %v1710_v43 = vadd.f32 %v1709_v17, %v1667_v37 }
 0x112   :  { %2417 = vmatpush3.msra.mxu1 %v1994_v51  ;;  %2366 = vmatprep.subr.mxu0 %v2009_v52  ;;  %v1670_v20 = vpop.f32.mrf.mxu0 }
 0x113   :  { %2402 = vmatprep.subr.mxu1 %v2009_v52  ;;  %2367 = vmatpush3.msra.mxu0 %v1993_v53  ;;  %v1713_v21 = vpop.f32.mrf.mxu1  ;;  %v1671_v44 = vadd.f32 %v1670_v20, %v345_v33  ;;  %v1712_v45 = vadd.f32 %v1711_v19, %v1669_v40 }
 0x114   :  { %2418 = vmatpush3.msra.mxu1 %v1993_v53  ;;  %2368 = vmatprep.subr.mxu0 %v2008_v54  ;;  %v1672_v23 = vpop.f32.mrf.mxu0 }
 0x115   :  { %2403 = vmatprep.subr.mxu1 %v2008_v54  ;;  %2369 = vmatpush3.msra.mxu0 %v1992_v55  ;;  %v1715_v24 = vpop.f32.mrf.mxu1  ;;  %v1673_v46 = vadd.f32 %v1672_v23, %v349_v36  ;;  %v1714_v50 = vadd.f32 %v1713_v21, %v1671_v44 }
 0x116   :  { %2419 = vmatpush3.msra.mxu1 %v1992_v55  ;;  %2370 = vmatprep.subr.mxu0 %v2007_v56 }
 0x117   :  { %2404 = vmatprep.subr.mxu1 %v2007_v56  ;;  %2371 = vmatpush3.msra.mxu0 %v1991_v57  ;;  %v1716_v52 = vadd.f32 %v1715_v24, %v1673_v46  ;;  %v2361_v24 = vld [vmem:[%s3102_s4] ss:$0 sm:$0xff] }
 0x118   :  { %2420 = vmatpush3.msra.mxu1 %v1991_v57  ;;  %2372 = vmatprep.subr.mxu0 %v2006_v58 }
 0x119   :  { %2405 = vmatprep.subr.mxu1 %v2006_v58  ;;  %2373 = vmatpush3.msra.mxu0 %v1990_v59 }
 0x11a   :  { %2421 = vmatpush3.msra.mxu1 %v1990_v59  ;;  %2374 = vmatprep.subr.mxu0 %v2005_v60 }
 0x11b   :  { %2406 = vmatprep.subr.mxu1 %v2005_v60  ;;  %2375 = vmatpush3.msra.mxu0 %v1989_v61 }
 0x11c   :  { %2422 = vmatpush3.msra.mxu1 %v1989_v61  ;;  %2376 = vmatprep.subr.mxu0 %v2004_v62 }
 0x11d   :  { %2407 = vmatprep.subr.mxu1 %v2004_v62  ;;  %2377 = vmatpush3.msra.mxu0 %v1988_v63 }
 0x11e   :  { %2423 = vmatpush3.msra.mxu1 %v1988_v63  ;;  %2378 = vmatprep.subr.mxu0 %v2003_v0 }
 0x11f   :  { %2408 = vmatprep.subr.mxu1 %v2003_v0  ;;  %2379 = vmatpush3.msra.mxu0 %v1987_v1 }
 0x120   :  { %2424 = vmatpush3.msra.mxu1 %v1987_v1  ;;  %2380 = vmatprep.subr.mxu0 %v2002_v2 }
 0x121   :  { %2409 = vmatprep.subr.mxu1 %v2002_v2  ;;  %2381 = vmatpush3.msra.mxu0 %v1986_v3 }
 0x122   :  { %2425 = vmatpush3.msra.mxu1 %v1986_v3  ;;  %2382 = vmatprep.subr.mxu0 %v2001_v4 }
 0x123   :  { %2410 = vmatprep.subr.mxu1 %v2001_v4  ;;  %2383 = vmatpush3.msra.mxu0 %v1985_v5 }
 0x124   :  { %2426 = vmatpush3.msra.mxu1 %v1985_v5  ;;  %2384 = vmatprep.subr.mxu0 %v2000_v6 }
 0x125   :  { %2411 = vmatprep.subr.mxu1 %v2000_v6  ;;  %2385 = vmatpush3.msra.mxu0 %v1984_v7 }
 0x126   :  { %2427 = vmatpush3.msra.mxu1 %v1984_v7  ;;  %2386 = vmatprep.subr.mxu0 %v1999_v8 }
 0x127   :  { %2412 = vmatprep.subr.mxu1 %v1999_v8  ;;  %2387 = vmatpush3.msra.mxu0 %v1983_v9 }
 0x128   :  { %2428 = vmatpush3.msra.mxu1 %v1983_v9  ;;  %2388 = vmatprep.subr.mxu0 %v1998_v10 }
 0x129   :  { %2413 = vmatprep.subr.mxu1 %v1998_v10  ;;  %2389 = vmatpush3.msra.mxu0 %v1982_v11 }
 0x12a   :  { %2429 = vmatpush3.msra.mxu1 %v1982_v11  ;;  %2390 = vmatprep.subr.mxu0 %v1997_v12 }
 0x12b   :  { %2414 = vmatprep.subr.mxu1 %v1997_v12  ;;  %2391 = vmatpush3.msra.mxu0 %v1981_v13 }
 0x12c   :  { %2430 = vmatpush3.msra.mxu1 %v1981_v13  ;;  %2392 = vmatprep.subr.mxu0 %v1996_v14 }
 0x12d   :  { %2415 = vmatprep.subr.mxu1 %v1996_v14  ;;  %2393 = vmatpush3.msra.mxu0 %v1980_v15 }
 0x12e   :  { %2431 = vmatpush3.msra.mxu1 %v1980_v15 }
 0x14e   :  { %v1752_v26 = vpop.f32.mrf.mxu0 }
 0x14f   :  { %v1795_v27 = vpop.f32.mrf.mxu1  ;;  %v1753_v47 = vadd.f32 %v1752_v26, %v1710_v43 }
 0x150   :  { %v1754_v30 = vpop.f32.mrf.mxu0 }
 0x151   :  { %v1797_v31 = vpop.f32.mrf.mxu1  ;;  %v1755_v51 = vadd.f32 %v1754_v30, %v1712_v45  ;;  %v1796_v53 = vadd.f32 %v1795_v27, %v1753_v47 }
 0x152   :  { %v1756_v34 = vpop.f32.mrf.mxu0 }
 0x153   :  { %v1799_v35 = vpop.f32.mrf.mxu1  ;;  %v1757_v54 = vadd.f32 %v1756_v34, %v1714_v50  ;;  %v1798_v57 = vadd.f32 %v1797_v31, %v1755_v51 }
 0x154   :  { %v1758_v38 = vpop.f32.mrf.mxu0 }
 0x155   :  { %v1801_v39 = vpop.f32.mrf.mxu1  ;;  %v1759_v58 = vadd.f32 %v1758_v38, %v1716_v52  ;;  %v1800_v60 = vadd.f32 %v1799_v35, %v1757_v54 }
 0x157   :  { %v1802_v0 = vadd.f32 %v1801_v39, %v1759_v58 }
 0x18e   :  { %v1838_v41 = vpop.f32.mrf.mxu0 }
 0x18f   :  { %v1881_v42 = vpop.f32.mrf.mxu1  ;;  %v1839_v59 = vadd.f32 %v1838_v41, %v1796_v53 }
 0x190   :  { %v1840_v48 = vpop.f32.mrf.mxu0 }
 0x191   :  { %v1883_v49 = vpop.f32.mrf.mxu1  ;;  %v1841_v61 = vadd.f32 %v1840_v48, %v1798_v57  ;;  %v1882_v1 = vadd.f32 %v1881_v42, %v1839_v59 }
 0x192   :  { %v1842_v55 = vpop.f32.mrf.mxu0 }
 0x193   :  { %v1885_v56 = vpop.f32.mrf.mxu1  ;;  %v1843_v2 = vadd.f32 %v1842_v55, %v1800_v60  ;;  %v1884_v5 = vadd.f32 %v1883_v49, %v1841_v61 }
 0x194   :  { %v1844_v62 = vpop.f32.mrf.mxu0 }
 0x195   :  { %v1887_v63 = vpop.f32.mrf.mxu1  ;;  %v1845_v6 = vadd.f32 %v1844_v62, %v1802_v0  ;;  %v1886_v10 = vadd.f32 %v1885_v56, %v1843_v2 }
 0x197   :  { %v1888_v15 = vadd.f32 %v1887_v63, %v1845_v6 }
 0x1ce   :  { %v1924_v3 = vpop.f32.mrf.mxu0 }
 0x1cf   :  { %v1967_v4 = vpop.f32.mrf.mxu1  ;;  %v1925_v7 = vadd.f32 %v1924_v3, %v1882_v1 }
 0x1d0   :  { %v1926_v8 = vpop.f32.mrf.mxu0 }
 0x1d1   :  { %v1969_v9 = vpop.f32.mrf.mxu1  ;;  %v1968_v11 = vadd.f32 %v1967_v4, %v1925_v7  ;;  %v1927_v12 = vadd.f32 %v1926_v8, %v1884_v5 }
 0x1d2   :  { %v1928_v13 = vpop.f32.mrf.mxu0 }
 0x1d3   :  { %v1971_v14 = vpop.f32.mrf.mxu1  ;;  %1976 = vst [vmem:[%s3103_s5] sm:$0xff] %v1968_v11  ;;  %v1970_v16 = vadd.f32 %v1969_v9, %v1927_v12  ;;  %v1929_v17 = vadd.f32 %v1928_v13, %v1886_v10 }
 0x1d4   :  { %v1930_v18 = vpop.f32.mrf.mxu0 }
 0x1d5   :  { %1977 = vst [vmem:[%s3103_s5 + $0x8] sm:$0xff] %v1970_v16  ;;  %v1972_v19 = vadd.f32 %v1971_v14, %v1929_v17  ;;  %v1931_v20 = vadd.f32 %v1930_v18, %v1888_v15  ;;  %2083 = vmatprep.mubr.f32.mxu0 %v1970_v16  ;;  %v1973_v21 = vpop.f32.mrf.mxu1 }
 0x1d6   :  { %2084 = vmatmul.mubr.f32.vlgmr.msra.gmra.mxu0 %v1968_v11 }
 0x1d7   :  { %1978 = vst [vmem:[%s3103_s5 + $0x10] sm:$0xff] %v1972_v19  ;;  %v1974_v22 = vadd.f32 %v1973_v21, %v1931_v20 }
 0x1d9   :  { %1979 = vst [vmem:[%s3103_s5 + $0x18] sm:$0xff] %v1974_v22  ;;  %2088 = vmatprep.mubr.f32.mxu1 %v1974_v22 }
 0x1da   :  { %2089 = vmatmul.mubr.f32.vlgmr.msra.gmra.mxu1 %v1972_v19 }
 0x296   :  { %v2394_v23 = vpop.f32.mrf.mxu0 }
 0x298   :  { %v2395_v25 = vpop.f32.mrf.mxu0 }
 0x299   :  { %v2396_v26 = vadd.f32 %v2395_v25, %v2394_v23 }
 0x29a   :  { %v2397_v27 = vpop.f32.mrf.mxu1 }
 0x29b   :  { %v2086_v28 = vadd.f32 %v2396_v26, %v2361_v24 }
 0x29c   :  { %v2398_v29 = vpop.f32.mrf.mxu1 }
 0x29d   :  { %2094 = vst [vmem:[%s3104_s6] sm:$0xff] %v2086_v28  ;;  %v2399_v30 = vadd.f32 %v2398_v29, %v2397_v27 }
 0x29f   :  { %v2091_v31 = vadd.f32 %v2399_v30, %v2361_v24 }
 0x2a1   :  { %2095 = vst [vmem:[%s3104_s6 + $0x8] sm:$0xff] %v2091_v31 }
 0x2a2   :  { %2104 = vsyncpa [#allocation3], 1 }

</bundles_post_ra>
